<compile_context>
chip_gen: v7x
topology: tpu7x:2x2x1
jax: 0.10.0
libtpu: 0.0.40
codegen_flags: <defaults>
</compile_context>

<pallas_src>
import math
import functools

import numpy as np
import jax
import jax.numpy as jnp
from jax.experimental import pallas as pl
from jax.experimental.pallas import tpu as pltpu


# ------------------------------ kernel helpers ------------------------------

def _layer_norm(x, gamma, beta, eps=1e-12):
    mu = jnp.mean(x, axis=-1, keepdims=True)
    var = jnp.mean((x - mu) ** 2, axis=-1, keepdims=True)
    return (x - mu) * jax.lax.rsqrt(var + eps) * gamma + beta


def _attention(q, k, v, mask, wo, bo, residual, gamma, beta, *,
               num_heads, head_dim, want_scores):
    """Multi-head attention + output projection + residual + LayerNorm.

    q is pre-scaled (1/sqrt(Dh) folded into Wq/bq by the wrapper).  Per-head
    contexts are concatenated into one lane-dense (Lq, D) slab so the output
    projection is a single D-deep matmul.  Pre-softmax (scaled + masked)
    scores are returned as a lane-dense (Lq, H*Lk) slab when requested.
    """
    q_bf = q.astype(jnp.bfloat16)
    k_bf = k.astype(jnp.bfloat16)
    v_bf = v.astype(jnp.bfloat16)

    ctx_parts = []
    score_parts = []
    for h in range(num_heads):
        lo = h * head_dim
        qh = q_bf[:, lo:lo + head_dim]                       # (Lq, Dh)
        kh = k_bf[:, lo:lo + head_dim]                       # (Lk, Dh)
        vh = v_bf[:, lo:lo + head_dim]                       # (Lk, Dh)
        s = jax.lax.dot_general(qh, kh, (((1,), (1,)), ((), ())),
                                preferred_element_type=jnp.float32)  # q @ k^T
        s = s + mask                                         # additive (1, Lk)
        if want_scores:
            score_parts.append(s)
        m = jnp.max(s, axis=-1, keepdims=True)
        e = jnp.exp(s - m)
        p = e / jnp.sum(e, axis=-1, keepdims=True)           # exact softmax
        ctx_parts.append(jnp.dot(p.astype(jnp.bfloat16), vh,
                                 preferred_element_type=jnp.float32))  # (Lq, Dh)

    ctx = jnp.concatenate(ctx_parts, axis=-1)                # (Lq, D) lane-dense
    proj = jnp.dot(ctx.astype(jnp.bfloat16), wo,
                   preferred_element_type=jnp.float32)       # single D-deep matmul
    out = _layer_norm(proj + bo + residual, gamma, beta)
    scores = jnp.concatenate(score_parts, axis=-1) if want_scores else None
    return out, scores


# ------------------------------ fused layer kernel ---------------------------

def _decoder_layer_kernel(
        # per-batch activation / mask blocks
        dec_ref, enc_ref, slf_mask_ref, enc_mask_ref,
        # self-attention params
        slf_wqkv_ref, slf_bqkv_ref, slf_wo_ref, slf_bo_ref, slf_g_ref, slf_b_ref,
        # cross-attention params
        enc_wq_ref, enc_bq_ref, enc_wkv_ref, enc_bkv_ref, enc_wo_ref, enc_bo_ref,
        enc_g_ref, enc_b_ref,
        # feed-forward params
        ffn_wi_ref, ffn_bi_ref, ffn_wo_ref, ffn_bo_ref, ffn_g_ref, ffn_b_ref,
        # outputs
        out_ref, scores_ref,
        *, num_heads, head_dim):
    D = num_heads * head_dim
    x = dec_ref[0]                    # (Ld, D) f32
    enc = enc_ref[0]                  # (Le, D) f32
    slf_mask = slf_mask_ref[0, 0]     # (1, Ld) additive
    enc_mask = enc_mask_ref[0, 0]     # (1, Le) additive

    # ---- self-attention: fused bf16 QKV matmul, scores never materialized ---
    qkv = jnp.dot(x.astype(jnp.bfloat16), slf_wqkv_ref[...],
                  preferred_element_type=jnp.float32) + slf_bqkv_ref[...]  # (Ld, 3D)
    slf_out, _ = _attention(
        qkv[:, :D], qkv[:, D:2 * D], qkv[:, 2 * D:], slf_mask,
        slf_wo_ref[...], slf_bo_ref[...], x, slf_g_ref[...], slf_b_ref[...],
        num_heads=num_heads, head_dim=head_dim, want_scores=False)

    # ---- cross-attention: fused bf16 KV matmul, scores are the layer output --
    q = jnp.dot(slf_out.astype(jnp.bfloat16), enc_wq_ref[...],
                preferred_element_type=jnp.float32) + enc_bq_ref[...]      # (Ld, D)
    kv = jnp.dot(enc.astype(jnp.bfloat16), enc_wkv_ref[...],
                 preferred_element_type=jnp.float32) + enc_bkv_ref[...]    # (Le, 2D)
    dec_out, scores = _attention(
        q, kv[:, :D], kv[:, D:], enc_mask,
        enc_wo_ref[...], enc_bo_ref[...], slf_out, enc_g_ref[...], enc_b_ref[...],
        num_heads=num_heads, head_dim=head_dim, want_scores=True)
    scores_ref[0] = scores            # (Ld, H*Le) lane-dense, stored ONCE

    # ---- FFN: dense -> exact gelu -> dense -> residual -> LayerNorm ---------
    h = jnp.dot(dec_out.astype(jnp.bfloat16), ffn_wi_ref[...],
                preferred_element_type=jnp.float32) + ffn_bi_ref[...]
    h = 0.5 * h * (1.0 + jax.lax.erf(h * (1.0 / math.sqrt(2.0))))   # BERT gelu
    h = jnp.dot(h.astype(jnp.bfloat16), ffn_wo_ref[...],
                preferred_element_type=jnp.float32) + ffn_bo_ref[...]
    out_ref[0] = _layer_norm(h + dec_out, ffn_g_ref[...], ffn_b_ref[...])


# ------------------------------ wrapper --------------------------------------

def _replicated_spec(shape):
    nd = len(shape)

    def idx(b):
        return (0,) * nd
    return pl.BlockSpec(shape, idx)


@functools.partial(jax.jit, static_argnames=('num_heads',))
def decoder_layer_forward(params, dec_input, enc_output, slf_attn_mask,
                          dec_enc_attn_mask, *, num_heads):
    """CustomDecoderLayer.forward -> (dec_output, dec_att_scores)."""
    B, Ld, D = dec_input.shape
    Le = enc_output.shape[1]
    Dh = D // num_heads
    scale = 1.0 / math.sqrt(Dh)
    bf16 = jnp.bfloat16

    # Fold the softmax scale into the Q projections (no per-score multiply in
    # kernel) and cast matmul weights to bf16; biases / LN params stay f32.
    qkv_col_scale = jnp.concatenate(
        [jnp.full((1, D), scale, jnp.float32), jnp.ones((1, 2 * D), jnp.float32)],
        axis=1)
    weights = (
        (params['slf_wqkv'] * qkv_col_scale).astype(bf16),   # slf_wqkv
        params['slf_bqkv'] * qkv_col_scale,                   # slf_bqkv
        params['slf_wo'].astype(bf16), params['slf_bo'],
        params['slf_ln_g'], params['slf_ln_b'],
        (params['enc_wq'] * scale).astype(bf16),              # enc_wq (scaled)
        params['enc_bq'] * scale,                             # enc_bq (scaled)
        params['enc_wkv'].astype(bf16), params['enc_bkv'],
        params['enc_wo'].astype(bf16), params['enc_bo'],
        params['enc_ln_g'], params['enc_ln_b'],
        params['ffn_wi'].astype(bf16), params['ffn_bi'],
        params['ffn_wo'].astype(bf16), params['ffn_bo'],
        params['ffn_ln_g'], params['ffn_ln_b'],
    )

    kernel = functools.partial(_decoder_layer_kernel,
                               num_heads=num_heads, head_dim=Dh)
    out, scores_flat = pl.pallas_call(
        kernel,
        out_shape=(jax.ShapeDtypeStruct((B, Ld, D), jnp.float32),
                   jax.ShapeDtypeStruct((B, Ld, num_heads * Le), jnp.float32)),
        grid=(B,),
        in_specs=[pl.BlockSpec((1, Ld, D), lambda b: (b, 0, 0)),
                  pl.BlockSpec((1, Le, D), lambda b: (b, 0, 0)),
                  pl.BlockSpec((1, 1, 1, Ld), lambda b: (b, 0, 0, 0)),
                  pl.BlockSpec((1, 1, 1, Le), lambda b: (b, 0, 0, 0))]
                 + [_replicated_spec(w.shape) for w in weights],
        out_specs=(pl.BlockSpec((1, Ld, D), lambda b: (b, 0, 0)),
                   pl.BlockSpec((1, Ld, num_heads * Le), lambda b: (b, 0, 0))),
        compiler_params=pltpu.CompilerParams(
            dimension_semantics=("parallel",),        # >=2 steps -> both v7x TCs
            vmem_limit_bytes=48 * 1024 * 1024),       # above v5e/v6e scoped default
    )(dec_input, enc_output, slf_attn_mask, dec_enc_attn_mask, *weights)

    # Layout plumbing outside the kernel: lane-dense (B, Ld, H*Le) slab back to
    # the module's (B, H, Ld, Le) pre-softmax scores.
    scores = jnp.transpose(scores_flat.reshape(B, Ld, num_heads, Le),
                           (0, 2, 1, 3))
    return out, scores


# ------------------------------ parameter init --------------------------------

def init_decoder_layer_params(key, hidden_size, intermediate_size):
    def linear(k, din, dout, scale=0.02):
        kw, kb = jax.random.split(k)
        return (scale * jax.random.normal(kw, (din, dout), jnp.float32),
                scale * jax.random.normal(kb, (1, dout), jnp.float32))

    ks = jax.random.split(key, 10)
    wq_s, bq_s = linear(ks[0], hidden_size, hidden_size)
    wk_s, bk_s = linear(ks[1], hidden_size, hidden_size)
    wv_s, bv_s = linear(ks[2], hidden_size, hidden_size)
    wo_s, bo_s = linear(ks[3], hidden_size, hidden_size)
    wq_e, bq_e = linear(ks[4], hidden_size, hidden_size)
    wk_e, bk_e = linear(ks[5], hidden_size, hidden_size)
    wv_e, bv_e = linear(ks[6], hidden_size, hidden_size)
    wo_e, bo_e = linear(ks[7], hidden_size, hidden_size)
    wi, bi = linear(ks[8], hidden_size, intermediate_size)
    wo2, bo2 = linear(ks[9], intermediate_size, hidden_size)
    ones = jnp.ones((1, hidden_size), jnp.float32)
    zeros = jnp.zeros((1, hidden_size), jnp.float32)
    return dict(
        slf_wqkv=jnp.concatenate([wq_s, wk_s, wv_s], axis=1),   # (D, 3D)
        slf_bqkv=jnp.concatenate([bq_s, bk_s, bv_s], axis=1),   # (1, 3D)
        slf_wo=wo_s, slf_bo=bo_s, slf_ln_g=ones, slf_ln_b=zeros,
        enc_wq=wq_e, enc_bq=bq_e,
        enc_wkv=jnp.concatenate([wk_e, wv_e], axis=1),          # (D, 2D)
        enc_bkv=jnp.concatenate([bk_e, bv_e], axis=1),          # (1, 2D)
        enc_wo=wo_e, enc_bo=bo_e, enc_ln_g=ones, enc_ln_b=zeros,
        ffn_wi=wi, ffn_bi=bi, ffn_wo=wo2, ffn_bo=bo2,
        ffn_ln_g=ones, ffn_ln_b=zeros)


# ------------------------------ pure-JAX reference ----------------------------

def _reference_layer(p, dec, enc, slf_mask, enc_mask, num_heads):
    D = dec.shape[-1]
    Dh = D // num_heads

    def ln(x, g, b):
        mu = x.mean(-1, keepdims=True)
        var = ((x - mu) ** 2).mean(-1, keepdims=True)
        return (x - mu) / jnp.sqrt(var + 1e-12) * g + b

    def split_heads(x):
        B, L, _ = x.shape
        return x.reshape(B, L, num_heads, Dh).transpose(0, 2, 1, 3)

    def attention(q_in, k_in, v_in, wq, bq, wk, bk, wv, bv, wo, bo, g, beta, mask):
        q = split_heads(q_in @ wq + bq)
        k = split_heads(k_in @ wk + bk)
        v = split_heads(v_in @ wv + bv)
        s = jnp.einsum('bhqd,bhkd->bhqk', q, k) * (1.0 / math.sqrt(Dh)) + mask
        pr = jax.nn.softmax(s, axis=-1)
        ctx = jnp.einsum('bhqk,bhkd->bhqd', pr, v)
        ctx = ctx.transpose(0, 2, 1, 3).reshape(q_in.shape)
        return ln(ctx @ wo + bo + q_in, g, beta), s

    wq_s, wk_s, wv_s = jnp.split(p['slf_wqkv'], 3, axis=1)
    bq_s, bk_s, bv_s = jnp.split(p['slf_bqkv'], 3, axis=1)
    slf_out, _ = attention(dec, dec, dec, wq_s, bq_s, wk_s, bk_s, wv_s, bv_s,
                           p['slf_wo'], p['slf_bo'], p['slf_ln_g'],
                           p['slf_ln_b'], slf_mask)
    wk_e, wv_e = jnp.split(p['enc_wkv'], 2, axis=1)
    bk_e, bv_e = jnp.split(p['enc_bkv'], 2, axis=1)
    dec_out, scores = attention(slf_out, enc, enc, p['enc_wq'], p['enc_bq'],
                                wk_e, bk_e, wv_e, bv_e, p['enc_wo'], p['enc_bo'],
                                p['enc_ln_g'], p['enc_ln_b'], enc_mask)
    h = dec_out @ p['ffn_wi'] + p['ffn_bi']
    h = 0.5 * h * (1.0 + jax.lax.erf(h * (1.0 / math.sqrt(2.0))))
    out = ln(h @ p['ffn_wo'] + p['ffn_bo'] + dec_out,
             p['ffn_ln_g'], p['ffn_ln_b'])
    return out, scores


# ---------------------------------- main --------------------------------------

if __name__ == "__main__":
    hidden, num_heads, inter = 32, 4, 64
    B, Ld, Le = 2, 8, 16

    key = jax.random.PRNGKey(0)
    k_par, k_dec, k_enc = jax.random.split(key, 3)
    params = init_decoder_layer_params(k_par, hidden, inter)

    dec_input = jax.random.normal(k_dec, (B, Ld, hidden), jnp.float32)
    enc_output = jax.random.normal(k_enc, (B, Le, hidden), jnp.float32)
    # BERT extended additive masks [B, 1, 1, L]: 0 keep / -10000 masked.
    slf_attn_mask = jnp.zeros((B, 1, 1, Ld), jnp.float32
                              ).at[1, :, :, Ld - 2:].set(-10000.0)
    dec_enc_attn_mask = jnp.zeros((B, 1, 1, Le), jnp.float32
                                  ).at[0, :, :, Le - 4:].set(-10000.0)

    out, dec_att_scores = decoder_layer_forward(
        params, dec_input, enc_output, slf_attn_mask, dec_enc_attn_mask,
        num_heads=num_heads)
    jax.block_until_ready(out)
    jax.block_until_ready(dec_att_scores)

    assert out.shape == (B, Ld, hidden)
    assert dec_att_scores.shape == (B, num_heads, Ld, Le)
    assert bool(jnp.all(jnp.isfinite(out)))

    # correctness check against a pure-JAX f32 reference (tolerance accounts
    # for the kernel's bf16 MXU operands; softmax itself is exact now).
    ref_out, ref_scores = _reference_layer(params, dec_input, enc_output,
                                           slf_attn_mask, dec_enc_attn_mask,
                                           num_heads)
    np.testing.assert_allclose(np.asarray(out), np.asarray(ref_out),
                               rtol=5e-2, atol=5e-2)
    np.testing.assert_allclose(np.asarray(dec_att_scores),
                               np.asarray(ref_scores), rtol=5e-2, atol=5e-2)

    print("KERNEL_OK")
</pallas_src>

<mosaic_0001>
module attributes {stable_mosaic.version = 11 : i64} {
  func.func @_decoder_layer_kernel(%arg0: i32, %arg1: memref<1x8x32xf32, #tpu.memory_space<vmem>>, %arg2: memref<1x16x32xf32, #tpu.memory_space<vmem>>, %arg3: memref<1x1x1x8xf32, #tpu.memory_space<vmem>>, %arg4: memref<1x1x1x16xf32, #tpu.memory_space<vmem>>, %arg5: memref<32x96xbf16, #tpu.memory_space<vmem>>, %arg6: memref<1x96xf32, #tpu.memory_space<vmem>>, %arg7: memref<32x32xbf16, #tpu.memory_space<vmem>>, %arg8: memref<1x32xf32, #tpu.memory_space<vmem>>, %arg9: memref<1x32xf32, #tpu.memory_space<vmem>>, %arg10: memref<1x32xf32, #tpu.memory_space<vmem>>, %arg11: memref<32x32xbf16, #tpu.memory_space<vmem>>, %arg12: memref<1x32xf32, #tpu.memory_space<vmem>>, %arg13: memref<32x64xbf16, #tpu.memory_space<vmem>>, %arg14: memref<1x64xf32, #tpu.memory_space<vmem>>, %arg15: memref<32x32xbf16, #tpu.memory_space<vmem>>, %arg16: memref<1x32xf32, #tpu.memory_space<vmem>>, %arg17: memref<1x32xf32, #tpu.memory_space<vmem>>, %arg18: memref<1x32xf32, #tpu.memory_space<vmem>>, %arg19: memref<32x64xbf16, #tpu.memory_space<vmem>>, %arg20: memref<1x64xf32, #tpu.memory_space<vmem>>, %arg21: memref<64x32xbf16, #tpu.memory_space<vmem>>, %arg22: memref<1x32xf32, #tpu.memory_space<vmem>>, %arg23: memref<1x32xf32, #tpu.memory_space<vmem>>, %arg24: memref<1x32xf32, #tpu.memory_space<vmem>>, %arg25: memref<1x8x32xf32, #tpu.memory_space<vmem>>, %arg26: memref<1x8x64xf32, #tpu.memory_space<vmem>>) attributes {dimension_semantics = [#tpu.dimension_semantics<parallel>], iteration_bounds = array<i64: 2>, scalar_prefetch = 0 : i64, scratch_operands = 0 : i64, tpu.core_type = #tpu.core_type<tc>, window_params = [{transform_indices = @transform_0, window_bounds = array<i64: 1, 8, 32>}, {transform_indices = @transform_1, window_bounds = array<i64: 1, 16, 32>}, {transform_indices = @transform_2, window_bounds = array<i64: 1, 1, 1, 8>}, {transform_indices = @transform_3, window_bounds = array<i64: 1, 1, 1, 16>}, {pipeline_mode = #tpu.pipeline_mode<synchronous>, transform_indices = @transform_4, window_bounds = array<i64: 32, 96>}, {pipeline_mode = #tpu.pipeline_mode<synchronous>, transform_indices = @transform_5, window_bounds = array<i64: 1, 96>}, {pipeline_mode = #tpu.pipeline_mode<synchronous>, transform_indices = @transform_6, window_bounds = array<i64: 32, 32>}, {pipeline_mode = #tpu.pipeline_mode<synchronous>, transform_indices = @transform_7, window_bounds = array<i64: 1, 32>}, {pipeline_mode = #tpu.pipeline_mode<synchronous>, transform_indices = @transform_8, window_bounds = array<i64: 1, 32>}, {pipeline_mode = #tpu.pipeline_mode<synchronous>, transform_indices = @transform_9, window_bounds = array<i64: 1, 32>}, {pipeline_mode = #tpu.pipeline_mode<synchronous>, transform_indices = @transform_10, window_bounds = array<i64: 32, 32>}, {pipeline_mode = #tpu.pipeline_mode<synchronous>, transform_indices = @transform_11, window_bounds = array<i64: 1, 32>}, {pipeline_mode = #tpu.pipeline_mode<synchronous>, transform_indices = @transform_12, window_bounds = array<i64: 32, 64>}, {pipeline_mode = #tpu.pipeline_mode<synchronous>, transform_indices = @transform_13, window_bounds = array<i64: 1, 64>}, {pipeline_mode = #tpu.pipeline_mode<synchronous>, transform_indices = @transform_14, window_bounds = array<i64: 32, 32>}, {pipeline_mode = #tpu.pipeline_mode<synchronous>, transform_indices = @transform_15, window_bounds = array<i64: 1, 32>}, {pipeline_mode = #tpu.pipeline_mode<synchronous>, transform_indices = @transform_16, window_bounds = array<i64: 1, 32>}, {pipeline_mode = #tpu.pipeline_mode<synchronous>, transform_indices = @transform_17, window_bounds = array<i64: 1, 32>}, {pipeline_mode = #tpu.pipeline_mode<synchronous>, transform_indices = @transform_18, window_bounds = array<i64: 32, 64>}, {pipeline_mode = #tpu.pipeline_mode<synchronous>, transform_indices = @transform_19, window_bounds = array<i64: 1, 64>}, {pipeline_mode = #tpu.pipeline_mode<synchronous>, transform_indices = @transform_20, window_bounds = array<i64: 64, 32>}, {pipeline_mode = #tpu.pipeline_mode<synchronous>, transform_indices = @transform_21, window_bounds = array<i64: 1, 32>}, {pipeline_mode = #tpu.pipeline_mode<synchronous>, transform_indices = @transform_22, window_bounds = array<i64: 1, 32>}, {pipeline_mode = #tpu.pipeline_mode<synchronous>, transform_indices = @transform_23, window_bounds = array<i64: 1, 32>}, {transform_indices = @transform_24, window_bounds = array<i64: 1, 8, 32>}, {transform_indices = @transform_25, window_bounds = array<i64: 1, 8, 64>}]} {
    %c0 = arith.constant 0 : index
    %c0_0 = arith.constant 0 : index
    %c0_1 = arith.constant 0 : index
    %0 = vector.load %arg1[%c0, %c0_0, %c0_1] : memref<1x8x32xf32, #tpu.memory_space<vmem>>, vector<1x8x32xf32>
    %1 = vector.shape_cast %0 : vector<1x8x32xf32> to vector<8x32xf32>
    %c0_2 = arith.constant 0 : index
    %c0_3 = arith.constant 0 : index
    %c0_4 = arith.constant 0 : index
    %2 = vector.load %arg2[%c0_2, %c0_3, %c0_4] : memref<1x16x32xf32, #tpu.memory_space<vmem>>, vector<1x16x32xf32>
    %3 = vector.shape_cast %2 : vector<1x16x32xf32> to vector<16x32xf32>
    %c0_5 = arith.constant 0 : index
    %c0_6 = arith.constant 0 : index
    %c0_7 = arith.constant 0 : index
    %c0_8 = arith.constant 0 : index
    %4 = vector.load %arg3[%c0_5, %c0_6, %c0_7, %c0_8] : memref<1x1x1x8xf32, #tpu.memory_space<vmem>>, vector<1x1x1x8xf32>
    %5 = vector.shape_cast %4 : vector<1x1x1x8xf32> to vector<1x8xf32>
    %c0_9 = arith.constant 0 : index
    %c0_10 = arith.constant 0 : index
    %c0_11 = arith.constant 0 : index
    %c0_12 = arith.constant 0 : index
    %6 = vector.load %arg4[%c0_9, %c0_10, %c0_11, %c0_12] : memref<1x1x1x16xf32, #tpu.memory_space<vmem>>, vector<1x1x1x16xf32>
    %7 = vector.shape_cast %6 : vector<1x1x1x16xf32> to vector<1x16xf32>
    %8 = arith.truncf %1 : vector<8x32xf32> to vector<8x32xbf16>
    %c0_13 = arith.constant 0 : index
    %c0_14 = arith.constant 0 : index
    %9 = vector.load %arg5[%c0_13, %c0_14] : memref<32x96xbf16, #tpu.memory_space<vmem>>, vector<32x96xbf16>
    %cst = arith.constant dense<0.000000e+00> : vector<8x96xf32>
    %10 = tpu.matmul %8, %9, %cst {dimension_numbers = #tpu.dot_dimension_numbers<[1], [0], [0], [1], [0, 0, 1, 1], [], []>} : vector<8x32xbf16>, vector<32x96xbf16>, vector<8x96xf32> -> vector<8x96xf32>
    %c0_15 = arith.constant 0 : index
    %c0_16 = arith.constant 0 : index
    %11 = vector.load %arg6[%c0_15, %c0_16] : memref<1x96xf32, #tpu.memory_space<vmem>>, vector<1x96xf32>
    %12 = vector.broadcast %11 : vector<1x96xf32> to vector<8x96xf32>
    %13 = arith.addf %10, %12 : vector<8x96xf32>
    %14 = vector.extract_strided_slice %13 {offsets = [0, 0], sizes = [8, 32], strides = [1, 1]} : vector<8x96xf32> to vector<8x32xf32>
    %15 = vector.extract_strided_slice %13 {offsets = [0, 32], sizes = [8, 32], strides = [1, 1]} : vector<8x96xf32> to vector<8x32xf32>
    %16 = vector.extract_strided_slice %13 {offsets = [0, 64], sizes = [8, 32], strides = [1, 1]} : vector<8x96xf32> to vector<8x32xf32>
    %c0_17 = arith.constant 0 : index
    %c0_18 = arith.constant 0 : index
    %17 = vector.load %arg7[%c0_17, %c0_18] : memref<32x32xbf16, #tpu.memory_space<vmem>>, vector<32x32xbf16>
    %c0_19 = arith.constant 0 : index
    %c0_20 = arith.constant 0 : index
    %18 = vector.load %arg8[%c0_19, %c0_20] : memref<1x32xf32, #tpu.memory_space<vmem>>, vector<1x32xf32>
    %c0_21 = arith.constant 0 : index
    %c0_22 = arith.constant 0 : index
    %19 = vector.load %arg9[%c0_21, %c0_22] : memref<1x32xf32, #tpu.memory_space<vmem>>, vector<1x32xf32>
    %c0_23 = arith.constant 0 : index
    %c0_24 = arith.constant 0 : index
    %20 = vector.load %arg10[%c0_23, %c0_24] : memref<1x32xf32, #tpu.memory_space<vmem>>, vector<1x32xf32>
    %21 = arith.truncf %14 : vector<8x32xf32> to vector<8x32xbf16>
    %22 = arith.truncf %15 : vector<8x32xf32> to vector<8x32xbf16>
    %23 = arith.truncf %16 : vector<8x32xf32> to vector<8x32xbf16>
    %24 = vector.extract_strided_slice %21 {offsets = [0, 0], sizes = [8, 8], strides = [1, 1]} : vector<8x32xbf16> to vector<8x8xbf16>
    %25 = vector.extract_strided_slice %22 {offsets = [0, 0], sizes = [8, 8], strides = [1, 1]} : vector<8x32xbf16> to vector<8x8xbf16>
    %26 = vector.extract_strided_slice %23 {offsets = [0, 0], sizes = [8, 8], strides = [1, 1]} : vector<8x32xbf16> to vector<8x8xbf16>
    %cst_25 = arith.constant dense<0.000000e+00> : vector<8x8xf32>
    %27 = tpu.matmul %24, %25, %cst_25 {dimension_numbers = #tpu.dot_dimension_numbers<[1], [1], [0], [0], [0, 0, 1, 0], [], []>} : vector<8x8xbf16>, vector<8x8xbf16>, vector<8x8xf32> -> vector<8x8xf32>
    %28 = vector.broadcast %5 : vector<1x8xf32> to vector<8x8xf32>
    %29 = arith.addf %27, %28 : vector<8x8xf32>
    %cst_26 = arith.constant dense<0xFF800000> : vector<8xf32>
    %30 = vector.multi_reduction <maximumf>, %29, %cst_26 [1] : vector<8x8xf32> to vector<8xf32>
    %31 = vector.shape_cast %30 : vector<8xf32> to vector<8x1xf32>
    %32 = vector.broadcast %31 : vector<8x1xf32> to vector<8x8xf32>
    %33 = arith.subf %29, %32 : vector<8x8xf32>
    %34 = math.exp %33 : vector<8x8xf32>
    %cst_27 = arith.constant dense<0.000000e+00> : vector<8xf32>
    %35 = vector.multi_reduction <add>, %34, %cst_27 [1] : vector<8x8xf32> to vector<8xf32>
    %36 = vector.shape_cast %35 : vector<8xf32> to vector<8x1xf32>
    %37 = vector.broadcast %36 : vector<8x1xf32> to vector<8x8xf32>
    %38 = arith.divf %34, %37 : vector<8x8xf32>
    %39 = arith.truncf %38 : vector<8x8xf32> to vector<8x8xbf16>
    %cst_28 = arith.constant dense<0.000000e+00> : vector<8x8xf32>
    %40 = tpu.matmul %39, %26, %cst_28 {dimension_numbers = #tpu.dot_dimension_numbers<[1], [0], [0], [1], [0, 0, 1, 1], [], []>} : vector<8x8xbf16>, vector<8x8xbf16>, vector<8x8xf32> -> vector<8x8xf32>
    %41 = vector.extract_strided_slice %21 {offsets = [0, 8], sizes = [8, 8], strides = [1, 1]} : vector<8x32xbf16> to vector<8x8xbf16>
    %42 = vector.extract_strided_slice %22 {offsets = [0, 8], sizes = [8, 8], strides = [1, 1]} : vector<8x32xbf16> to vector<8x8xbf16>
    %43 = vector.extract_strided_slice %23 {offsets = [0, 8], sizes = [8, 8], strides = [1, 1]} : vector<8x32xbf16> to vector<8x8xbf16>
    %cst_29 = arith.constant dense<0.000000e+00> : vector<8x8xf32>
    %44 = tpu.matmul %41, %42, %cst_29 {dimension_numbers = #tpu.dot_dimension_numbers<[1], [1], [0], [0], [0, 0, 1, 0], [], []>} : vector<8x8xbf16>, vector<8x8xbf16>, vector<8x8xf32> -> vector<8x8xf32>
    %45 = vector.broadcast %5 : vector<1x8xf32> to vector<8x8xf32>
    %46 = arith.addf %44, %45 : vector<8x8xf32>
    %cst_30 = arith.constant dense<0xFF800000> : vector<8xf32>
    %47 = vector.multi_reduction <maximumf>, %46, %cst_30 [1] : vector<8x8xf32> to vector<8xf32>
    %48 = vector.shape_cast %47 : vector<8xf32> to vector<8x1xf32>
    %49 = vector.broadcast %48 : vector<8x1xf32> to vector<8x8xf32>
    %50 = arith.subf %46, %49 : vector<8x8xf32>
    %51 = math.exp %50 : vector<8x8xf32>
    %cst_31 = arith.constant dense<0.000000e+00> : vector<8xf32>
    %52 = vector.multi_reduction <add>, %51, %cst_31 [1] : vector<8x8xf32> to vector<8xf32>
    %53 = vector.shape_cast %52 : vector<8xf32> to vector<8x1xf32>
    %54 = vector.broadcast %53 : vector<8x1xf32> to vector<8x8xf32>
    %55 = arith.divf %51, %54 : vector<8x8xf32>
    %56 = arith.truncf %55 : vector<8x8xf32> to vector<8x8xbf16>
    %cst_32 = arith.constant dense<0.000000e+00> : vector<8x8xf32>
    %57 = tpu.matmul %56, %43, %cst_32 {dimension_numbers = #tpu.dot_dimension_numbers<[1], [0], [0], [1], [0, 0, 1, 1], [], []>} : vector<8x8xbf16>, vector<8x8xbf16>, vector<8x8xf32> -> vector<8x8xf32>
    %58 = vector.extract_strided_slice %21 {offsets = [0, 16], sizes = [8, 8], strides = [1, 1]} : vector<8x32xbf16> to vector<8x8xbf16>
    %59 = vector.extract_strided_slice %22 {offsets = [0, 16], sizes = [8, 8], strides = [1, 1]} : vector<8x32xbf16> to vector<8x8xbf16>
    %60 = vector.extract_strided_slice %23 {offsets = [0, 16], sizes = [8, 8], strides = [1, 1]} : vector<8x32xbf16> to vector<8x8xbf16>
    %cst_33 = arith.constant dense<0.000000e+00> : vector<8x8xf32>
    %61 = tpu.matmul %58, %59, %cst_33 {dimension_numbers = #tpu.dot_dimension_numbers<[1], [1], [0], [0], [0, 0, 1, 0], [], []>} : vector<8x8xbf16>, vector<8x8xbf16>, vector<8x8xf32> -> vector<8x8xf32>
    %62 = vector.broadcast %5 : vector<1x8xf32> to vector<8x8xf32>
    %63 = arith.addf %61, %62 : vector<8x8xf32>
    %cst_34 = arith.constant dense<0xFF800000> : vector<8xf32>
    %64 = vector.multi_reduction <maximumf>, %63, %cst_34 [1] : vector<8x8xf32> to vector<8xf32>
    %65 = vector.shape_cast %64 : vector<8xf32> to vector<8x1xf32>
    %66 = vector.broadcast %65 : vector<8x1xf32> to vector<8x8xf32>
    %67 = arith.subf %63, %66 : vector<8x8xf32>
    %68 = math.exp %67 : vector<8x8xf32>
    %cst_35 = arith.constant dense<0.000000e+00> : vector<8xf32>
    %69 = vector.multi_reduction <add>, %68, %cst_35 [1] : vector<8x8xf32> to vector<8xf32>
    %70 = vector.shape_cast %69 : vector<8xf32> to vector<8x1xf32>
    %71 = vector.broadcast %70 : vector<8x1xf32> to vector<8x8xf32>
    %72 = arith.divf %68, %71 : vector<8x8xf32>
    %73 = arith.truncf %72 : vector<8x8xf32> to vector<8x8xbf16>
    %cst_36 = arith.constant dense<0.000000e+00> : vector<8x8xf32>
    %74 = tpu.matmul %73, %60, %cst_36 {dimension_numbers = #tpu.dot_dimension_numbers<[1], [0], [0], [1], [0, 0, 1, 1], [], []>} : vector<8x8xbf16>, vector<8x8xbf16>, vector<8x8xf32> -> vector<8x8xf32>
    %75 = vector.extract_strided_slice %21 {offsets = [0, 24], sizes = [8, 8], strides = [1, 1]} : vector<8x32xbf16> to vector<8x8xbf16>
    %76 = vector.extract_strided_slice %22 {offsets = [0, 24], sizes = [8, 8], strides = [1, 1]} : vector<8x32xbf16> to vector<8x8xbf16>
    %77 = vector.extract_strided_slice %23 {offsets = [0, 24], sizes = [8, 8], strides = [1, 1]} : vector<8x32xbf16> to vector<8x8xbf16>
    %cst_37 = arith.constant dense<0.000000e+00> : vector<8x8xf32>
    %78 = tpu.matmul %75, %76, %cst_37 {dimension_numbers = #tpu.dot_dimension_numbers<[1], [1], [0], [0], [0, 0, 1, 0], [], []>} : vector<8x8xbf16>, vector<8x8xbf16>, vector<8x8xf32> -> vector<8x8xf32>
    %79 = vector.broadcast %5 : vector<1x8xf32> to vector<8x8xf32>
    %80 = arith.addf %78, %79 : vector<8x8xf32>
    %cst_38 = arith.constant dense<0xFF800000> : vector<8xf32>
    %81 = vector.multi_reduction <maximumf>, %80, %cst_38 [1] : vector<8x8xf32> to vector<8xf32>
    %82 = vector.shape_cast %81 : vector<8xf32> to vector<8x1xf32>
    %83 = vector.broadcast %82 : vector<8x1xf32> to vector<8x8xf32>
    %84 = arith.subf %80, %83 : vector<8x8xf32>
    %85 = math.exp %84 : vector<8x8xf32>
    %cst_39 = arith.constant dense<0.000000e+00> : vector<8xf32>
    %86 = vector.multi_reduction <add>, %85, %cst_39 [1] : vector<8x8xf32> to vector<8xf32>
    %87 = vector.shape_cast %86 : vector<8xf32> to vector<8x1xf32>
    %88 = vector.broadcast %87 : vector<8x1xf32> to vector<8x8xf32>
    %89 = arith.divf %85, %88 : vector<8x8xf32>
    %90 = arith.truncf %89 : vector<8x8xf32> to vector<8x8xbf16>
    %cst_40 = arith.constant dense<0.000000e+00> : vector<8x8xf32>
    %91 = tpu.matmul %90, %77, %cst_40 {dimension_numbers = #tpu.dot_dimension_numbers<[1], [0], [0], [1], [0, 0, 1, 1], [], []>} : vector<8x8xbf16>, vector<8x8xbf16>, vector<8x8xf32> -> vector<8x8xf32>
    %92 = tpu.concatenate %40, %57, %74, %91 in 1 : vector<8x8xf32>, vector<8x8xf32>, vector<8x8xf32>, vector<8x8xf32> -> vector<8x32xf32>
    %93 = arith.truncf %92 : vector<8x32xf32> to vector<8x32xbf16>
    %cst_41 = arith.constant dense<0.000000e+00> : vector<8x32xf32>
    %94 = tpu.matmul %93, %17, %cst_41 {dimension_numbers = #tpu.dot_dimension_numbers<[1], [0], [0], [1], [0, 0, 1, 1], [], []>} : vector<8x32xbf16>, vector<32x32xbf16>, vector<8x32xf32> -> vector<8x32xf32>
    %95 = vector.broadcast %18 : vector<1x32xf32> to vector<8x32xf32>
    %96 = arith.addf %94, %95 : vector<8x32xf32>
    %97 = arith.addf %96, %1 : vector<8x32xf32>
    %cst_42 = arith.constant dense<0.000000e+00> : vector<8xf32>
    %98 = vector.multi_reduction <add>, %97, %cst_42 [1] : vector<8x32xf32> to vector<8xf32>
    %99 = vector.shape_cast %98 : vector<8xf32> to vector<8x1xf32>
    %cst_43 = arith.constant 3.200000e+01 : f32
    %100 = vector.broadcast %cst_43 : f32 to vector<8x1xf32>
    %101 = arith.divf %99, %100 : vector<8x1xf32>
    %102 = vector.broadcast %101 : vector<8x1xf32> to vector<8x32xf32>
    %103 = arith.subf %97, %102 : vector<8x32xf32>
    %104 = arith.mulf %103, %103 : vector<8x32xf32>
    %cst_44 = arith.constant dense<0.000000e+00> : vector<8xf32>
    %105 = vector.multi_reduction <add>, %104, %cst_44 [1] : vector<8x32xf32> to vector<8xf32>
    %106 = vector.shape_cast %105 : vector<8xf32> to vector<8x1xf32>
    %cst_45 = arith.constant 3.200000e+01 : f32
    %107 = vector.broadcast %cst_45 : f32 to vector<8x1xf32>
    %108 = arith.divf %106, %107 : vector<8x1xf32>
    %109 = vector.broadcast %101 : vector<8x1xf32> to vector<8x32xf32>
    %110 = arith.subf %97, %109 : vector<8x32xf32>
    %cst_46 = arith.constant 9.99999996E-13 : f32
    %111 = vector.broadcast %cst_46 : f32 to vector<8x1xf32>
    %112 = arith.addf %108, %111 : vector<8x1xf32>
    %113 = math.rsqrt %112 : vector<8x1xf32>
    %114 = vector.broadcast %113 : vector<8x1xf32> to vector<8x32xf32>
    %115 = arith.mulf %110, %114 : vector<8x32xf32>
    %116 = vector.broadcast %19 : vector<1x32xf32> to vector<8x32xf32>
    %117 = arith.mulf %115, %116 : vector<8x32xf32>
    %118 = vector.broadcast %20 : vector<1x32xf32> to vector<8x32xf32>
    %119 = arith.addf %117, %118 : vector<8x32xf32>
    %120 = arith.truncf %119 : vector<8x32xf32> to vector<8x32xbf16>
    %c0_47 = arith.constant 0 : index
    %c0_48 = arith.constant 0 : index
    %121 = vector.load %arg11[%c0_47, %c0_48] : memref<32x32xbf16, #tpu.memory_space<vmem>>, vector<32x32xbf16>
    %cst_49 = arith.constant dense<0.000000e+00> : vector<8x32xf32>
    %122 = tpu.matmul %120, %121, %cst_49 {dimension_numbers = #tpu.dot_dimension_numbers<[1], [0], [0], [1], [0, 0, 1, 1], [], []>} : vector<8x32xbf16>, vector<32x32xbf16>, vector<8x32xf32> -> vector<8x32xf32>
    %c0_50 = arith.constant 0 : index
    %c0_51 = arith.constant 0 : index
    %123 = vector.load %arg12[%c0_50, %c0_51] : memref<1x32xf32, #tpu.memory_space<vmem>>, vector<1x32xf32>
    %124 = vector.broadcast %123 : vector<1x32xf32> to vector<8x32xf32>
    %125 = arith.addf %122, %124 : vector<8x32xf32>
    %126 = arith.truncf %3 : vector<16x32xf32> to vector<16x32xbf16>
    %c0_52 = arith.constant 0 : index
    %c0_53 = arith.constant 0 : index
    %127 = vector.load %arg13[%c0_52, %c0_53] : memref<32x64xbf16, #tpu.memory_space<vmem>>, vector<32x64xbf16>
    %cst_54 = arith.constant dense<0.000000e+00> : vector<16x64xf32>
    %128 = tpu.matmul %126, %127, %cst_54 {dimension_numbers = #tpu.dot_dimension_numbers<[1], [0], [0], [1], [0, 0, 1, 1], [], []>} : vector<16x32xbf16>, vector<32x64xbf16>, vector<16x64xf32> -> vector<16x64xf32>
    %c0_55 = arith.constant 0 : index
    %c0_56 = arith.constant 0 : index
    %129 = vector.load %arg14[%c0_55, %c0_56] : memref<1x64xf32, #tpu.memory_space<vmem>>, vector<1x64xf32>
    %130 = vector.broadcast %129 : vector<1x64xf32> to vector<16x64xf32>
    %131 = arith.addf %128, %130 : vector<16x64xf32>
    %132 = vector.extract_strided_slice %131 {offsets = [0, 0], sizes = [16, 32], strides = [1, 1]} : vector<16x64xf32> to vector<16x32xf32>
    %133 = vector.extract_strided_slice %131 {offsets = [0, 32], sizes = [16, 32], strides = [1, 1]} : vector<16x64xf32> to vector<16x32xf32>
    %c0_57 = arith.constant 0 : index
    %c0_58 = arith.constant 0 : index
    %134 = vector.load %arg15[%c0_57, %c0_58] : memref<32x32xbf16, #tpu.memory_space<vmem>>, vector<32x32xbf16>
    %c0_59 = arith.constant 0 : index
    %c0_60 = arith.constant 0 : index
    %135 = vector.load %arg16[%c0_59, %c0_60] : memref<1x32xf32, #tpu.memory_space<vmem>>, vector<1x32xf32>
    %c0_61 = arith.constant 0 : index
    %c0_62 = arith.constant 0 : index
    %136 = vector.load %arg17[%c0_61, %c0_62] : memref<1x32xf32, #tpu.memory_space<vmem>>, vector<1x32xf32>
    %c0_63 = arith.constant 0 : index
    %c0_64 = arith.constant 0 : index
    %137 = vector.load %arg18[%c0_63, %c0_64] : memref<1x32xf32, #tpu.memory_space<vmem>>, vector<1x32xf32>
    %138 = arith.truncf %125 : vector<8x32xf32> to vector<8x32xbf16>
    %139 = arith.truncf %132 : vector<16x32xf32> to vector<16x32xbf16>
    %140 = arith.truncf %133 : vector<16x32xf32> to vector<16x32xbf16>
    %141 = vector.extract_strided_slice %138 {offsets = [0, 0], sizes = [8, 8], strides = [1, 1]} : vector<8x32xbf16> to vector<8x8xbf16>
    %142 = vector.extract_strided_slice %139 {offsets = [0, 0], sizes = [16, 8], strides = [1, 1]} : vector<16x32xbf16> to vector<16x8xbf16>
    %143 = vector.extract_strided_slice %140 {offsets = [0, 0], sizes = [16, 8], strides = [1, 1]} : vector<16x32xbf16> to vector<16x8xbf16>
    %cst_65 = arith.constant dense<0.000000e+00> : vector<8x16xf32>
    %144 = tpu.matmul %141, %142, %cst_65 {dimension_numbers = #tpu.dot_dimension_numbers<[1], [1], [0], [0], [0, 0, 1, 0], [], []>} : vector<8x8xbf16>, vector<16x8xbf16>, vector<8x16xf32> -> vector<8x16xf32>
    %145 = vector.broadcast %7 : vector<1x16xf32> to vector<8x16xf32>
    %146 = arith.addf %144, %145 : vector<8x16xf32>
    %cst_66 = arith.constant dense<0xFF800000> : vector<8xf32>
    %147 = vector.multi_reduction <maximumf>, %146, %cst_66 [1] : vector<8x16xf32> to vector<8xf32>
    %148 = vector.shape_cast %147 : vector<8xf32> to vector<8x1xf32>
    %149 = vector.broadcast %148 : vector<8x1xf32> to vector<8x16xf32>
    %150 = arith.subf %146, %149 : vector<8x16xf32>
    %151 = math.exp %150 : vector<8x16xf32>
    %cst_67 = arith.constant dense<0.000000e+00> : vector<8xf32>
    %152 = vector.multi_reduction <add>, %151, %cst_67 [1] : vector<8x16xf32> to vector<8xf32>
    %153 = vector.shape_cast %152 : vector<8xf32> to vector<8x1xf32>
    %154 = vector.broadcast %153 : vector<8x1xf32> to vector<8x16xf32>
    %155 = arith.divf %151, %154 : vector<8x16xf32>
    %156 = arith.truncf %155 : vector<8x16xf32> to vector<8x16xbf16>
    %cst_68 = arith.constant dense<0.000000e+00> : vector<8x8xf32>
    %157 = tpu.matmul %156, %143, %cst_68 {dimension_numbers = #tpu.dot_dimension_numbers<[1], [0], [0], [1], [0, 0, 1, 1], [], []>} : vector<8x16xbf16>, vector<16x8xbf16>, vector<8x8xf32> -> vector<8x8xf32>
    %158 = vector.extract_strided_slice %138 {offsets = [0, 8], sizes = [8, 8], strides = [1, 1]} : vector<8x32xbf16> to vector<8x8xbf16>
    %159 = vector.extract_strided_slice %139 {offsets = [0, 8], sizes = [16, 8], strides = [1, 1]} : vector<16x32xbf16> to vector<16x8xbf16>
    %160 = vector.extract_strided_slice %140 {offsets = [0, 8], sizes = [16, 8], strides = [1, 1]} : vector<16x32xbf16> to vector<16x8xbf16>
    %cst_69 = arith.constant dense<0.000000e+00> : vector<8x16xf32>
    %161 = tpu.matmul %158, %159, %cst_69 {dimension_numbers = #tpu.dot_dimension_numbers<[1], [1], [0], [0], [0, 0, 1, 0], [], []>} : vector<8x8xbf16>, vector<16x8xbf16>, vector<8x16xf32> -> vector<8x16xf32>
    %162 = vector.broadcast %7 : vector<1x16xf32> to vector<8x16xf32>
    %163 = arith.addf %161, %162 : vector<8x16xf32>
    %cst_70 = arith.constant dense<0xFF800000> : vector<8xf32>
    %164 = vector.multi_reduction <maximumf>, %163, %cst_70 [1] : vector<8x16xf32> to vector<8xf32>
    %165 = vector.shape_cast %164 : vector<8xf32> to vector<8x1xf32>
    %166 = vector.broadcast %165 : vector<8x1xf32> to vector<8x16xf32>
    %167 = arith.subf %163, %166 : vector<8x16xf32>
    %168 = math.exp %167 : vector<8x16xf32>
    %cst_71 = arith.constant dense<0.000000e+00> : vector<8xf32>
    %169 = vector.multi_reduction <add>, %168, %cst_71 [1] : vector<8x16xf32> to vector<8xf32>
    %170 = vector.shape_cast %169 : vector<8xf32> to vector<8x1xf32>
    %171 = vector.broadcast %170 : vector<8x1xf32> to vector<8x16xf32>
    %172 = arith.divf %168, %171 : vector<8x16xf32>
    %173 = arith.truncf %172 : vector<8x16xf32> to vector<8x16xbf16>
    %cst_72 = arith.constant dense<0.000000e+00> : vector<8x8xf32>
    %174 = tpu.matmul %173, %160, %cst_72 {dimension_numbers = #tpu.dot_dimension_numbers<[1], [0], [0], [1], [0, 0, 1, 1], [], []>} : vector<8x16xbf16>, vector<16x8xbf16>, vector<8x8xf32> -> vector<8x8xf32>
    %175 = vector.extract_strided_slice %138 {offsets = [0, 16], sizes = [8, 8], strides = [1, 1]} : vector<8x32xbf16> to vector<8x8xbf16>
    %176 = vector.extract_strided_slice %139 {offsets = [0, 16], sizes = [16, 8], strides = [1, 1]} : vector<16x32xbf16> to vector<16x8xbf16>
    %177 = vector.extract_strided_slice %140 {offsets = [0, 16], sizes = [16, 8], strides = [1, 1]} : vector<16x32xbf16> to vector<16x8xbf16>
    %cst_73 = arith.constant dense<0.000000e+00> : vector<8x16xf32>
    %178 = tpu.matmul %175, %176, %cst_73 {dimension_numbers = #tpu.dot_dimension_numbers<[1], [1], [0], [0], [0, 0, 1, 0], [], []>} : vector<8x8xbf16>, vector<16x8xbf16>, vector<8x16xf32> -> vector<8x16xf32>
    %179 = vector.broadcast %7 : vector<1x16xf32> to vector<8x16xf32>
    %180 = arith.addf %178, %179 : vector<8x16xf32>
    %cst_74 = arith.constant dense<0xFF800000> : vector<8xf32>
    %181 = vector.multi_reduction <maximumf>, %180, %cst_74 [1] : vector<8x16xf32> to vector<8xf32>
    %182 = vector.shape_cast %181 : vector<8xf32> to vector<8x1xf32>
    %183 = vector.broadcast %182 : vector<8x1xf32> to vector<8x16xf32>
    %184 = arith.subf %180, %183 : vector<8x16xf32>
    %185 = math.exp %184 : vector<8x16xf32>
    %cst_75 = arith.constant dense<0.000000e+00> : vector<8xf32>
    %186 = vector.multi_reduction <add>, %185, %cst_75 [1] : vector<8x16xf32> to vector<8xf32>
    %187 = vector.shape_cast %186 : vector<8xf32> to vector<8x1xf32>
    %188 = vector.broadcast %187 : vector<8x1xf32> to vector<8x16xf32>
    %189 = arith.divf %185, %188 : vector<8x16xf32>
    %190 = arith.truncf %189 : vector<8x16xf32> to vector<8x16xbf16>
    %cst_76 = arith.constant dense<0.000000e+00> : vector<8x8xf32>
    %191 = tpu.matmul %190, %177, %cst_76 {dimension_numbers = #tpu.dot_dimension_numbers<[1], [0], [0], [1], [0, 0, 1, 1], [], []>} : vector<8x16xbf16>, vector<16x8xbf16>, vector<8x8xf32> -> vector<8x8xf32>
    %192 = vector.extract_strided_slice %138 {offsets = [0, 24], sizes = [8, 8], strides = [1, 1]} : vector<8x32xbf16> to vector<8x8xbf16>
    %193 = vector.extract_strided_slice %139 {offsets = [0, 24], sizes = [16, 8], strides = [1, 1]} : vector<16x32xbf16> to vector<16x8xbf16>
    %194 = vector.extract_strided_slice %140 {offsets = [0, 24], sizes = [16, 8], strides = [1, 1]} : vector<16x32xbf16> to vector<16x8xbf16>
    %cst_77 = arith.constant dense<0.000000e+00> : vector<8x16xf32>
    %195 = tpu.matmul %192, %193, %cst_77 {dimension_numbers = #tpu.dot_dimension_numbers<[1], [1], [0], [0], [0, 0, 1, 0], [], []>} : vector<8x8xbf16>, vector<16x8xbf16>, vector<8x16xf32> -> vector<8x16xf32>
    %196 = vector.broadcast %7 : vector<1x16xf32> to vector<8x16xf32>
    %197 = arith.addf %195, %196 : vector<8x16xf32>
    %cst_78 = arith.constant dense<0xFF800000> : vector<8xf32>
    %198 = vector.multi_reduction <maximumf>, %197, %cst_78 [1] : vector<8x16xf32> to vector<8xf32>
    %199 = vector.shape_cast %198 : vector<8xf32> to vector<8x1xf32>
    %200 = vector.broadcast %199 : vector<8x1xf32> to vector<8x16xf32>
    %201 = arith.subf %197, %200 : vector<8x16xf32>
    %202 = math.exp %201 : vector<8x16xf32>
    %cst_79 = arith.constant dense<0.000000e+00> : vector<8xf32>
    %203 = vector.multi_reduction <add>, %202, %cst_79 [1] : vector<8x16xf32> to vector<8xf32>
    %204 = vector.shape_cast %203 : vector<8xf32> to vector<8x1xf32>
    %205 = vector.broadcast %204 : vector<8x1xf32> to vector<8x16xf32>
    %206 = arith.divf %202, %205 : vector<8x16xf32>
    %207 = arith.truncf %206 : vector<8x16xf32> to vector<8x16xbf16>
    %cst_80 = arith.constant dense<0.000000e+00> : vector<8x8xf32>
    %208 = tpu.matmul %207, %194, %cst_80 {dimension_numbers = #tpu.dot_dimension_numbers<[1], [0], [0], [1], [0, 0, 1, 1], [], []>} : vector<8x16xbf16>, vector<16x8xbf16>, vector<8x8xf32> -> vector<8x8xf32>
    %209 = tpu.concatenate %157, %174, %191, %208 in 1 : vector<8x8xf32>, vector<8x8xf32>, vector<8x8xf32>, vector<8x8xf32> -> vector<8x32xf32>
    %210 = arith.truncf %209 : vector<8x32xf32> to vector<8x32xbf16>
    %cst_81 = arith.constant dense<0.000000e+00> : vector<8x32xf32>
    %211 = tpu.matmul %210, %134, %cst_81 {dimension_numbers = #tpu.dot_dimension_numbers<[1], [0], [0], [1], [0, 0, 1, 1], [], []>} : vector<8x32xbf16>, vector<32x32xbf16>, vector<8x32xf32> -> vector<8x32xf32>
    %212 = vector.broadcast %135 : vector<1x32xf32> to vector<8x32xf32>
    %213 = arith.addf %211, %212 : vector<8x32xf32>
    %214 = arith.addf %213, %119 : vector<8x32xf32>
    %cst_82 = arith.constant dense<0.000000e+00> : vector<8xf32>
    %215 = vector.multi_reduction <add>, %214, %cst_82 [1] : vector<8x32xf32> to vector<8xf32>
    %216 = vector.shape_cast %215 : vector<8xf32> to vector<8x1xf32>
    %cst_83 = arith.constant 3.200000e+01 : f32
    %217 = vector.broadcast %cst_83 : f32 to vector<8x1xf32>
    %218 = arith.divf %216, %217 : vector<8x1xf32>
    %219 = vector.broadcast %218 : vector<8x1xf32> to vector<8x32xf32>
    %220 = arith.subf %214, %219 : vector<8x32xf32>
    %221 = arith.mulf %220, %220 : vector<8x32xf32>
    %cst_84 = arith.constant dense<0.000000e+00> : vector<8xf32>
    %222 = vector.multi_reduction <add>, %221, %cst_84 [1] : vector<8x32xf32> to vector<8xf32>
    %223 = vector.shape_cast %222 : vector<8xf32> to vector<8x1xf32>
    %cst_85 = arith.constant 3.200000e+01 : f32
    %224 = vector.broadcast %cst_85 : f32 to vector<8x1xf32>
    %225 = arith.divf %223, %224 : vector<8x1xf32>
    %226 = vector.broadcast %218 : vector<8x1xf32> to vector<8x32xf32>
    %227 = arith.subf %214, %226 : vector<8x32xf32>
    %cst_86 = arith.constant 9.99999996E-13 : f32
    %228 = vector.broadcast %cst_86 : f32 to vector<8x1xf32>
    %229 = arith.addf %225, %228 : vector<8x1xf32>
    %230 = math.rsqrt %229 : vector<8x1xf32>
    %231 = vector.broadcast %230 : vector<8x1xf32> to vector<8x32xf32>
    %232 = arith.mulf %227, %231 : vector<8x32xf32>
    %233 = vector.broadcast %136 : vector<1x32xf32> to vector<8x32xf32>
    %234 = arith.mulf %232, %233 : vector<8x32xf32>
    %235 = vector.broadcast %137 : vector<1x32xf32> to vector<8x32xf32>
    %236 = arith.addf %234, %235 : vector<8x32xf32>
    %237 = tpu.concatenate %146, %163, %180, %197 in 1 : vector<8x16xf32>, vector<8x16xf32>, vector<8x16xf32>, vector<8x16xf32> -> vector<8x64xf32>
    %c0_87 = arith.constant 0 : index
    %c0_88 = arith.constant 0 : index
    %c0_89 = arith.constant 0 : index
    %238 = vector.load %arg26[%c0_87, %c0_88, %c0_89] : memref<1x8x64xf32, #tpu.memory_space<vmem>>, vector<1x8x64xf32>
    %239 = vector.shape_cast %238 : vector<1x8x64xf32> to vector<8x64xf32>
    %240 = vector.shape_cast %237 : vector<8x64xf32> to vector<1x8x64xf32>
    tpu.vector_store %arg26[%c0_87, %c0_88, %c0_89], %240 {strides = array<i32>} : memref<1x8x64xf32, #tpu.memory_space<vmem>>, vector<1x8x64xf32>,
    %241 = arith.truncf %236 : vector<8x32xf32> to vector<8x32xbf16>
    %c0_90 = arith.constant 0 : index
    %c0_91 = arith.constant 0 : index
    %242 = vector.load %arg19[%c0_90, %c0_91] : memref<32x64xbf16, #tpu.memory_space<vmem>>, vector<32x64xbf16>
    %cst_92 = arith.constant dense<0.000000e+00> : vector<8x64xf32>
    %243 = tpu.matmul %241, %242, %cst_92 {dimension_numbers = #tpu.dot_dimension_numbers<[1], [0], [0], [1], [0, 0, 1, 1], [], []>} : vector<8x32xbf16>, vector<32x64xbf16>, vector<8x64xf32> -> vector<8x64xf32>
    %c0_93 = arith.constant 0 : index
    %c0_94 = arith.constant 0 : index
    %244 = vector.load %arg20[%c0_93, %c0_94] : memref<1x64xf32, #tpu.memory_space<vmem>>, vector<1x64xf32>
    %245 = vector.broadcast %244 : vector<1x64xf32> to vector<8x64xf32>
    %246 = arith.addf %243, %245 : vector<8x64xf32>
    %cst_95 = arith.constant 5.000000e-01 : f32
    %247 = vector.broadcast %cst_95 : f32 to vector<8x64xf32>
    %248 = arith.mulf %247, %246 : vector<8x64xf32>
    %cst_96 = arith.constant 0.707106769 : f32
    %249 = vector.broadcast %cst_96 : f32 to vector<8x64xf32>
    %250 = arith.mulf %246, %249 : vector<8x64xf32>
    %251 = math.erf %250 : vector<8x64xf32>
    %cst_97 = arith.constant 1.000000e+00 : f32
    %252 = vector.broadcast %cst_97 : f32 to vector<8x64xf32>
    %253 = arith.addf %252, %251 : vector<8x64xf32>
    %254 = arith.mulf %248, %253 : vector<8x64xf32>
    %255 = arith.truncf %254 : vector<8x64xf32> to vector<8x64xbf16>
    %c0_98 = arith.constant 0 : index
    %c0_99 = arith.constant 0 : index
    %256 = vector.load %arg21[%c0_98, %c0_99] : memref<64x32xbf16, #tpu.memory_space<vmem>>, vector<64x32xbf16>
    %cst_100 = arith.constant dense<0.000000e+00> : vector<8x32xf32>
    %257 = tpu.matmul %255, %256, %cst_100 {dimension_numbers = #tpu.dot_dimension_numbers<[1], [0], [0], [1], [0, 0, 1, 1], [], []>} : vector<8x64xbf16>, vector<64x32xbf16>, vector<8x32xf32> -> vector<8x32xf32>
    %c0_101 = arith.constant 0 : index
    %c0_102 = arith.constant 0 : index
    %258 = vector.load %arg22[%c0_101, %c0_102] : memref<1x32xf32, #tpu.memory_space<vmem>>, vector<1x32xf32>
    %259 = vector.broadcast %258 : vector<1x32xf32> to vector<8x32xf32>
    %260 = arith.addf %257, %259 : vector<8x32xf32>
    %261 = arith.addf %260, %236 : vector<8x32xf32>
    %c0_103 = arith.constant 0 : index
    %c0_104 = arith.constant 0 : index
    %262 = vector.load %arg23[%c0_103, %c0_104] : memref<1x32xf32, #tpu.memory_space<vmem>>, vector<1x32xf32>
    %c0_105 = arith.constant 0 : index
    %c0_106 = arith.constant 0 : index
    %263 = vector.load %arg24[%c0_105, %c0_106] : memref<1x32xf32, #tpu.memory_space<vmem>>, vector<1x32xf32>
    %cst_107 = arith.constant dense<0.000000e+00> : vector<8xf32>
    %264 = vector.multi_reduction <add>, %261, %cst_107 [1] : vector<8x32xf32> to vector<8xf32>
    %265 = vector.shape_cast %264 : vector<8xf32> to vector<8x1xf32>
    %cst_108 = arith.constant 3.200000e+01 : f32
    %266 = vector.broadcast %cst_108 : f32 to vector<8x1xf32>
    %267 = arith.divf %265, %266 : vector<8x1xf32>
    %268 = vector.broadcast %267 : vector<8x1xf32> to vector<8x32xf32>
    %269 = arith.subf %261, %268 : vector<8x32xf32>
    %270 = arith.mulf %269, %269 : vector<8x32xf32>
    %cst_109 = arith.constant dense<0.000000e+00> : vector<8xf32>
    %271 = vector.multi_reduction <add>, %270, %cst_109 [1] : vector<8x32xf32> to vector<8xf32>
    %272 = vector.shape_cast %271 : vector<8xf32> to vector<8x1xf32>
    %cst_110 = arith.constant 3.200000e+01 : f32
    %273 = vector.broadcast %cst_110 : f32 to vector<8x1xf32>
    %274 = arith.divf %272, %273 : vector<8x1xf32>
    %275 = vector.broadcast %267 : vector<8x1xf32> to vector<8x32xf32>
    %276 = arith.subf %261, %275 : vector<8x32xf32>
    %cst_111 = arith.constant 9.99999996E-13 : f32
    %277 = vector.broadcast %cst_111 : f32 to vector<8x1xf32>
    %278 = arith.addf %274, %277 : vector<8x1xf32>
    %279 = math.rsqrt %278 : vector<8x1xf32>
    %280 = vector.broadcast %279 : vector<8x1xf32> to vector<8x32xf32>
    %281 = arith.mulf %276, %280 : vector<8x32xf32>
    %282 = vector.broadcast %262 : vector<1x32xf32> to vector<8x32xf32>
    %283 = arith.mulf %281, %282 : vector<8x32xf32>
    %284 = vector.broadcast %263 : vector<1x32xf32> to vector<8x32xf32>
    %285 = arith.addf %283, %284 : vector<8x32xf32>
    %c0_112 = arith.constant 0 : index
    %c0_113 = arith.constant 0 : index
    %c0_114 = arith.constant 0 : index
    %286 = vector.load %arg25[%c0_112, %c0_113, %c0_114] : memref<1x8x32xf32, #tpu.memory_space<vmem>>, vector<1x8x32xf32>
    %287 = vector.shape_cast %286 : vector<1x8x32xf32> to vector<8x32xf32>
    %288 = vector.shape_cast %285 : vector<8x32xf32> to vector<1x8x32xf32>
    tpu.vector_store %arg25[%c0_112, %c0_113, %c0_114], %288 {strides = array<i32>} : memref<1x8x32xf32, #tpu.memory_space<vmem>>, vector<1x8x32xf32>,
    return
  }
  func.func @transform_0(%arg0: i32) -> (i32, i32, i32) {
    %c0_i32 = arith.constant 0 : i32
    %c0_i32_0 = arith.constant 0 : i32
    %c0_i32_1 = arith.constant 0 : i32
    return %arg0, %c0_i32, %c0_i32_0 : i32, i32, i32
  }
  func.func @transform_1(%arg0: i32) -> (i32, i32, i32) {
    %c0_i32 = arith.constant 0 : i32
    %c0_i32_0 = arith.constant 0 : i32
    %c0_i32_1 = arith.constant 0 : i32
    return %arg0, %c0_i32, %c0_i32_0 : i32, i32, i32
  }
  func.func @transform_2(%arg0: i32) -> (i32, i32, i32, i32) {
    %c0_i32 = arith.constant 0 : i32
    %c0_i32_0 = arith.constant 0 : i32
    %c0_i32_1 = arith.constant 0 : i32
    %c0_i32_2 = arith.constant 0 : i32
    return %arg0, %c0_i32, %c0_i32_0, %c0_i32_1 : i32, i32, i32, i32
  }
  func.func @transform_3(%arg0: i32) -> (i32, i32, i32, i32) {
    %c0_i32 = arith.constant 0 : i32
    %c0_i32_0 = arith.constant 0 : i32
    %c0_i32_1 = arith.constant 0 : i32
    %c0_i32_2 = arith.constant 0 : i32
    return %arg0, %c0_i32, %c0_i32_0, %c0_i32_1 : i32, i32, i32, i32
  }
  func.func @transform_4(%arg0: i32) -> (i32, i32) {
    %c0_i32 = arith.constant 0 : i32
    %c0_i32_0 = arith.constant 0 : i32
    %c0_i32_1 = arith.constant 0 : i32
    return %c0_i32, %c0_i32_0 : i32, i32
  }
  func.func @transform_5(%arg0: i32) -> (i32, i32) {
    %c0_i32 = arith.constant 0 : i32
    %c0_i32_0 = arith.constant 0 : i32
    %c0_i32_1 = arith.constant 0 : i32
    return %c0_i32, %c0_i32_0 : i32, i32
  }
  func.func @transform_6(%arg0: i32) -> (i32, i32) {
    %c0_i32 = arith.constant 0 : i32
    %c0_i32_0 = arith.constant 0 : i32
    %c0_i32_1 = arith.constant 0 : i32
    return %c0_i32, %c0_i32_0 : i32, i32
  }
  func.func @transform_7(%arg0: i32) -> (i32, i32) {
    %c0_i32 = arith.constant 0 : i32
    %c0_i32_0 = arith.constant 0 : i32
    %c0_i32_1 = arith.constant 0 : i32
    return %c0_i32, %c0_i32_0 : i32, i32
  }
  func.func @transform_8(%arg0: i32) -> (i32, i32) {
    %c0_i32 = arith.constant 0 : i32
    %c0_i32_0 = arith.constant 0 : i32
    %c0_i32_1 = arith.constant 0 : i32
    return %c0_i32, %c0_i32_0 : i32, i32
  }
  func.func @transform_9(%arg0: i32) -> (i32, i32) {
    %c0_i32 = arith.constant 0 : i32
    %c0_i32_0 = arith.constant 0 : i32
    %c0_i32_1 = arith.constant 0 : i32
    return %c0_i32, %c0_i32_0 : i32, i32
  }
  func.func @transform_10(%arg0: i32) -> (i32, i32) {
    %c0_i32 = arith.constant 0 : i32
    %c0_i32_0 = arith.constant 0 : i32
    %c0_i32_1 = arith.constant 0 : i32
    return %c0_i32, %c0_i32_0 : i32, i32
  }
  func.func @transform_11(%arg0: i32) -> (i32, i32) {
    %c0_i32 = arith.constant 0 : i32
    %c0_i32_0 = arith.constant 0 : i32
    %c0_i32_1 = arith.constant 0 : i32
    return %c0_i32, %c0_i32_0 : i32, i32
  }
  func.func @transform_12(%arg0: i32) -> (i32, i32) {
    %c0_i32 = arith.constant 0 : i32
    %c0_i32_0 = arith.constant 0 : i32
    %c0_i32_1 = arith.constant 0 : i32
    return %c0_i32, %c0_i32_0 : i32, i32
  }
  func.func @transform_13(%arg0: i32) -> (i32, i32) {
    %c0_i32 = arith.constant 0 : i32
    %c0_i32_0 = arith.constant 0 : i32
    %c0_i32_1 = arith.constant 0 : i32
    return %c0_i32, %c0_i32_0 : i32, i32
  }
  func.func @transform_14(%arg0: i32) -> (i32, i32) {
    %c0_i32 = arith.constant 0 : i32
    %c0_i32_0 = arith.constant 0 : i32
    %c0_i32_1 = arith.constant 0 : i32
    return %c0_i32, %c0_i32_0 : i32, i32
  }
  func.func @transform_15(%arg0: i32) -> (i32, i32) {
    %c0_i32 = arith.constant 0 : i32
    %c0_i32_0 = arith.constant 0 : i32
    %c0_i32_1 = arith.constant 0 : i32
    return %c0_i32, %c0_i32_0 : i32, i32
  }
  func.func @transform_16(%arg0: i32) -> (i32, i32) {
    %c0_i32 = arith.constant 0 : i32
    %c0_i32_0 = arith.constant 0 : i32
    %c0_i32_1 = arith.constant 0 : i32
    return %c0_i32, %c0_i32_0 : i32, i32
  }
  func.func @transform_17(%arg0: i32) -> (i32, i32) {
    %c0_i32 = arith.constant 0 : i32
    %c0_i32_0 = arith.constant 0 : i32
    %c0_i32_1 = arith.constant 0 : i32
    return %c0_i32, %c0_i32_0 : i32, i32
  }
  func.func @transform_18(%arg0: i32) -> (i32, i32) {
    %c0_i32 = arith.constant 0 : i32
    %c0_i32_0 = arith.constant 0 : i32
    %c0_i32_1 = arith.constant 0 : i32
    return %c0_i32, %c0_i32_0 : i32, i32
  }
  func.func @transform_19(%arg0: i32) -> (i32, i32) {
    %c0_i32 = arith.constant 0 : i32
    %c0_i32_0 = arith.constant 0 : i32
    %c0_i32_1 = arith.constant 0 : i32
    return %c0_i32, %c0_i32_0 : i32, i32
  }
  func.func @transform_20(%arg0: i32) -> (i32, i32) {
    %c0_i32 = arith.constant 0 : i32
    %c0_i32_0 = arith.constant 0 : i32
    %c0_i32_1 = arith.constant 0 : i32
    return %c0_i32, %c0_i32_0 : i32, i32
  }
  func.func @transform_21(%arg0: i32) -> (i32, i32) {
    %c0_i32 = arith.constant 0 : i32
    %c0_i32_0 = arith.constant 0 : i32
    %c0_i32_1 = arith.constant 0 : i32
    return %c0_i32, %c0_i32_0 : i32, i32
  }
  func.func @transform_22(%arg0: i32) -> (i32, i32) {
    %c0_i32 = arith.constant 0 : i32
    %c0_i32_0 = arith.constant 0 : i32
    %c0_i32_1 = arith.constant 0 : i32
    return %c0_i32, %c0_i32_0 : i32, i32
  }
  func.func @transform_23(%arg0: i32) -> (i32, i32) {
    %c0_i32 = arith.constant 0 : i32
    %c0_i32_0 = arith.constant 0 : i32
    %c0_i32_1 = arith.constant 0 : i32
    return %c0_i32, %c0_i32_0 : i32, i32
  }
  func.func @transform_24(%arg0: i32) -> (i32, i32, i32) {
    %c0_i32 = arith.constant 0 : i32
    %c0_i32_0 = arith.constant 0 : i32
    %c0_i32_1 = arith.constant 0 : i32
    return %arg0, %c0_i32, %c0_i32_0 : i32, i32, i32
  }
  func.func @transform_25(%arg0: i32) -> (i32, i32, i32) {
    %c0_i32 = arith.constant 0 : i32
    %c0_i32_0 = arith.constant 0 : i32
    %c0_i32_1 = arith.constant 0 : i32
    return %arg0, %c0_i32, %c0_i32_0 : i32, i32, i32
  }
}

</mosaic_0001>

<bundles_post_ra>
// kernel: mul.15
= control target key start
LH: loop header
LB: loop body
LE: loop exit
PB: predicated region body
PF: predicated region fallthrough
CT: control target
= control target key end

     0   :  { %s34_s0 = inlined_call_operand.vmem [shape: f32[1,96], index: 0, kind: input, shape index: {}]   ;;  %s35_s1 = inlined_call_operand.vmem [shape: f32[1,96], index: 1, kind: input, shape index: {}]   ;;  %s36_s2 = inlined_call_operand.vmem [shape: f32[1,96], index: 2, kind: output, shape index: {}]  }
   0x1   :  { %v3_v0 = vld [vmem:[%s34_s0] sm:$0x1] }
   0x2   :  { %v4_v1 = vld [vmem:[%s35_s1] sm:$0x1] }
   0x3   :  { %v7_v2 = vmul.f32 %v4_v1, %v3_v0 }
   0x5   :  { %9 = vst [vmem:[%s36_s2] sm:$0x1] %v7_v2 }

// kernel: decoder_layer_forward.1
= control target key start
LH: loop header
LB: loop body
LE: loop exit
PB: predicated region body
PF: predicated region fallthrough
CT: control target
= control target key end

     0   :  { %s3516_s0 = inlined_call_operand.vmem [shape: f32[2,8,32], index: 0, kind: input, shape index: {}]   ;;  %s3517_s1 = inlined_call_operand.vmem [shape: f32[2,16,32], index: 1, kind: input, shape index: {}]   ;;  %s3518_s2 = inlined_call_operand.vmem [shape: f32[2,1,1,8], index: 2, kind: input, shape index: {}]   ;;  %s3519_s3 = inlined_call_operand.vmem [shape: f32[2,1,1,16], index: 3, kind: input, shape index: {}]   ;;  %s3520_s4 = inlined_call_operand.vmem [shape: bf16[32,96], index: 4, kind: input, shape index: {}]   ;;  %s3521_s5 = inlined_call_operand.vmem [shape: f32[1,96], index: 5, kind: input, shape index: {}]   ;;  %s3522_s6 = inlined_call_operand.vmem [shape: bf16[32,32], index: 6, kind: input, shape index: {}]   ;;  %s3523_s7 = inlined_call_operand.vmem [shape: f32[1,32], index: 7, kind: input, shape index: {}]   ;;  %s3524_s8 = inlined_call_operand.vmem [shape: f32[1,32], index: 8, kind: input, shape index: {}]   ;;  %s3525_s9 = inlined_call_operand.vmem [shape: f32[1,32], index: 9, kind: input, shape index: {}]   ;;  %s3526_s10 = inlined_call_operand.vmem [shape: bf16[32,32], index: 10, kind: input, shape index: {}]   ;;  %s3527_s11 = inlined_call_operand.vmem [shape: f32[1,32], index: 11, kind: input, shape index: {}]   ;;  %s3528_s12 = inlined_call_operand.vmem [shape: bf16[32,64], index: 12, kind: input, shape index: {}]   ;;  %s3529_s13 = inlined_call_operand.vmem [shape: f32[1,64], index: 13, kind: input, shape index: {}]   ;;  %s3530_s14 = inlined_call_operand.vmem [shape: bf16[32,32], index: 14, kind: input, shape index: {}]   ;;  %s3531_s15 = inlined_call_operand.vmem [shape: f32[1,32], index: 15, kind: input, shape index: {}]   ;;  %s3532_s16 = inlined_call_operand.vmem [shape: f32[1,32], index: 16, kind: input, shape index: {}]   ;;  %s3533_s17 = inlined_call_operand.vmem [shape: f32[1,32], index: 17, kind: input, shape index: {}]   ;;  %s3534_s18 = inlined_call_operand.vmem [shape: bf16[32,64], index: 18, kind: input, shape index: {}]   ;;  %s3535_s19 = inlined_call_operand.vmem [shape: f32[1,64], index: 19, kind: input, shape index: {}]   ;;  %s3536_s20 = inlined_call_operand.vmem [shape: bf16[64,32], index: 20, kind: input, shape index: {}]   ;;  %s3537_s21 = inlined_call_operand.vmem [shape: f32[1,32], index: 21, kind: input, shape index: {}]   ;;  %s3538_s22 = inlined_call_operand.vmem [shape: f32[1,32], index: 22, kind: input, shape index: {}]   ;;  %s3539_s23 = inlined_call_operand.vmem [shape: f32[1,32], index: 23, kind: input, shape index: {}]   ;;  %s3540_s24 = inlined_call_operand.hbm [shape: f32[2,8,32], index: 24, kind: output, shape index: {0}]   ;;  %s3541_s25 = inlined_call_operand.vmem [shape: f32[2,8,64], index: 25, kind: output, shape index: {1}]  }
   0x1   :  { %3566 = sst [smem:[#allocation9_spill]] %s3516_s0 }
   0x2   :  { %3567 = sst [smem:[#allocation10_spill]] %s3517_s1 }
   0x3   :  { %3568 = sst [smem:[#allocation11_spill]] %s3518_s2 }
   0x4   :  { %3569 = sst [smem:[#allocation12_spill]] %s3519_s3 }
   0x5   :  { %3570 = sst [smem:[#allocation13_spill]] %s3520_s4 }
   0x6   :  { %3571 = sst [smem:[#allocation14_spill]] %s3521_s5 }
   0x7   :  { %3572 = sst [smem:[#allocation15_spill]] %s3522_s6 }
   0x8   :  { %3573 = sst [smem:[#allocation16_spill]] %s3523_s7 }
   0x9   :  { %3574 = sst [smem:[#allocation17_spill]] %s3524_s8 }
   0xa   :  { %3575 = sst [smem:[#allocation18_spill]] %s3525_s9 }
   0xb   :  { %3576 = sst [smem:[#allocation19_spill]] %s3526_s10 }
   0xc   :  { %3577 = sst [smem:[#allocation20_spill]] %s3527_s11 }
   0xd   :  { %31 = vsyncpa [#allocation3], 0 }
   0xe   :  { %33 = vsyncpa [#allocation3 + $0x1], 0  ;;  %s3082_s29 = smov 0   ;;  %s3084_s2 = smov 0  }
   0xf   :  { %s3086_s6 = smov 0   ;;  %s3088_s30 = smov 0  }
  0x10 LB: > { %3578 = sst [smem:[#allocation5_spill]] %s2928_s6  ;;  %s3103_s7 = sadd.s32 4294967295, %s2932_s30   ;;  %s2932_s30 = sphi %s3088_s30, %s3609_s30   ;;  %s2928_s6 = sphi %s3086_s6, %s3611_s6   ;;  %s2924_s2 = sphi %s3084_s2, %s3613_s2   ;;  %s2920_s29 = sphi %s3082_s29, %s3612_s29  }
  0x11   : > { %s2479_s3 = sadd.s32 4294967294, %s2932_s30   ;;  %s3107_s26 = sadd.s32 1, %s2932_s30  }
  0x12   : > { %3579 = sst [smem:[#allocation6_spill]] %s3107_s26  ;;  %s570_s1 = sadd.s32 1, %s2928_s6 }
  0x13   : > { %s567_s8 = ssub.s32 %s2932_s30, %s3107_s26  ;;  %p580_p0 = scmp.ne.s32.totalorder %s2928_s6, %s2924_s2 }
  0x14   : > { %p568_p1 = scmp.eq.s32.totalorder %s567_s8, 0  ;;  %p581_p2 = scmp.eq.s32.totalorder %s3103_s7, 1 }
  0x15   : > { %p586_p3 = scmp.ne.s32.totalorder %s2924_s2, %s2920_s29  ;;  %p587_p4 = scmp.eq.s32.totalorder %s2479_s3, 1 }
  0x16   : > { %s3118_s27 = scalar_select %p568_p1, %s2928_s6, %s570_s1  }
  0x17   : > { %p3120_p5 = por %p581_p2, %p580_p0  ;;  %p3124_p6 = por %p587_p4, %p586_p3 }
  0x18   : > { %3580 = sst [smem:[#allocation7_spill]] %s3118_s27  ;;  %p2482_p7 = scmp.ge.s32.totalorder %s2932_s30, 1 }
  0x19   : > { %s3582_s28 = scalar_select %p3124_p6, 1, 0 }
  0x1a   : > { %p718_p8 = scmp.lt.s32.totalorder %s2932_s30, 3 }
  0x1b   : > { %3583 = sst [smem:[#allocation8_spill]] %s3582_s28 }
  0x1c   : > { %p719_p9 = pnand %p2482_p7, %p718_p8 }
  0x1d   : > { %s3584_s0 = sld [smem:[#allocation13_spill]] (!%p719_p9)  ;;  %v2934_v1 = vmov (!%p719_p9), 0.0   ;;  %vm2935_vm0 = vmmov (!%p719_p9), 0   ;;  %p800_p10 = scmp.lt.s32.totalorder (!%p719_p9), %s3103_s7, 1  ;;  %vm849_vm1 = vcmask (!%p719_p9), 261120   ;;  %vm910_vm2 = vcmask (!%p719_p9), 64512  }
  0x1e   : > { %722 = sbr.rel (%p719_p9) target bundleno = 4358 (0x1106), region = 116  ;;  %2602 = vmatprep.subr.bf16.mxu1 (!%p719_p9), %v2934_v1  ;;  %2616 = vmatprep.subr.bf16.mxu0 (!%p719_p9), %v2934_v1  ;;  %s3585_s1 = sld [smem:[#allocation9_spill]] (!%p719_p9)  ;;  %vm974_vm3 = vcmask (!%p719_p9), 1043456   ;;  %vm1361_vm4 = vcmask (!%p719_p9), 130048   ;;  %vm1363_vm5 = vcmask (!%p719_p9), 195584   ;;  %vm2157_vm6 = vcmask (!%p719_p9), 523264  }
  0x1f   : > { %2606 = vmatprep.mubr.msk.bf16.mxu1 (!%p719_p9), %vm2935_vm0, %v2934_v1  ;;  %2618 = vmatprep.mubr.msk.bf16.mxu0 (!%p719_p9), %vm2935_vm0, %v2934_v1  ;;  %s3586_s26 = sld [smem:[#allocation14_spill]] (!%p719_p9)  ;;  %s3553_s5 = smov (!%p719_p9), 96   ;;  %vm2155_vm7 = vcmask (!%p719_p9), 392192  }
  0x20   : > { %s3551_s3 = smov (!%p719_p9), 80   ;;  %s3549_s6 = smov (!%p719_p9), 88  }
  0x21   : > { %s3556_s27 = smov (!%p719_p9), 112   ;;  %s3591_s10 = sld [smem:[#allocation19_spill]] (!%p719_p9) }
  0x22   : > { %s3597_s11 = sld [smem:[#allocation20_spill]] (!%p719_p9)  ;;  %s3606_s28 = smov (!%p719_p9), 48  }
  0x23   : > { %v2814_v0 = vld [vmem:[%s3584_s0] sm:$0xff] (!%p719_p9)   ;;  %v2815_v2 = vld [vmem:[%s3584_s0 + $0x8] sm:$0xff] (!%p719_p9)  }
  0x24   : > { %2603 = vmatpush3.bf16.msra.mxu1 (!%p719_p9), %v2814_v0 }
  0x25   : > { %2604 = vmatprep.subr.bf16.mxu1 %v2934_v1  ;;  %s3145_s8 = scalar_select %p800_p10, %s3103_s7, 1  ;;  %v2488_v5 = vld [vmem:[%s3586_s26] ss:$0 sm:$0xff] }
  0x26   : > { %s3550_s26 = smov 72  }
  0x27   : > { %s3548_s9 = sshll.u32 %s3145_s8, 3 }
  0x28   : > { %2605 = vmatpush3.bf16.msra.mxu1 %v2815_v2  ;;  %s803_s0 = scalar_lea.vmem %s3585_s1, %s3548_s9  ;;  %s3554_s1 = smov 104  }
  0x29   : > { %2610 = vmatprep.subr.bf16.mxu1 %v2934_v1  ;;  %v3154_v3 = vld [vmem:[%s803_s0] sm:$0xff]  ;;  %s3562_s0 = smov 120   ;;  %s2943_s9 = smov 56  }
  0x2a   : > { %v825_v4 = vpack.c.bf16 %v3154_v3, %v3154_v3 }
  0x2c   : > { %2607 = vmatmul.mubr.msk.bf16.vlgmr.msra.gmra.mrb[0].mxu1 %vm849_vm1, %v825_v4 }
  0x2d   : > { %2612 = vmatprep.mubr.msk.bf16.mxu1 %vm2935_vm0, %v2934_v1 }
  0xff   : > { %v887_v6 = vpop.f32.mrb[0].mxu1 }
 0x100   : > { %v888_v7 = vadd.f32 %v2488_v5, %v887_v6  ;;  %v2608_v8 = vpop.f32.mrb[1].mxu1 }
 0x101   : > { %v890_v9 = vpop.f32.mrb[2].mxu1 }
 0x102   : > { %v3164_v10 = vpack.c.bf16 %v888_v7, %v888_v7  ;;  %v2609_v11 = vpop.f32.mrb[3].mxu1 }
 0x104   : > { %1018 = vrot.lane.b32.xlu1 %v3164_v10, %s3562_s0  ;;  %908 = vrot.lane.b32.xlu0 %v3164_v10, %s3553_s5  ;;  %s3596_s5 = smov 104  }
 0x108   : > { %1130 = vrot.lane.b32.xlu1 %v3164_v10, %s3551_s3  ;;  %1020 = vrot.lane.b32.xlu0 %v3164_v10, %s3549_s6  ;;  %s2945_s6 = smov 40  }
 0x10c   : > { %1240 = vrot.lane.b32.xlu1 %v3164_v10, %s3550_s26  ;;  %1128 = vrot.lane.b32.xlu0 %v3164_v10, %s3556_s27  ;;  %s3587_s26 = sld [smem:[#allocation11_spill]]  ;;  %s3559_s27 = smov 16  }
 0x110   : > { %1238 = vrot.lane.b32.xlu0 %v3164_v10, %s3554_s1  ;;  %s3592_s1 = sld [smem:[#allocation17_spill]] }
 0x112   : > { %s811_s3 = scalar_lea.vmem %s3587_s26, %s3145_s8  ;;  %s3552_s26 = smov 48  }
 0x113   : > { %v2492_v23 = vld [vmem:[%s811_s3] ss:$0 sm:$0xff]  ;;  %s2944_s3 = smov 64  }
 0x176   : > { %v909_v12 = vpop.permute.xlu0 %908  ;;  %v1019_v15 = vpop.permute.xlu1 %1018 }
 0x177   : > { %v915_v13 = vsel %vm910_vm2, %v909_v12, 0 }
 0x178   : > { %2611 = vmatpush3.bf16.xpose.msra.mxu1 %v915_v13 }
 0x179   : > { %2622 = vmatprep.subr.bf16.mxu1 %v2934_v1 }
 0x17a   : > { %v1021_v14 = vpop.permute.xlu0 %1020  ;;  %v1131_v17 = vpop.permute.xlu1 %1130 }
 0x17b   : > { %v1026_v16 = vsel %vm910_vm2, %v1021_v14, 0  ;;  %v1136_v18 = vsel %vm910_vm2, %v1131_v17, 0 }
 0x17e   : > { %v1241_v19 = vpop.permute.xlu1 %1240  ;;  %v1129_v20 = vpop.permute.xlu0 %1128 }
 0x17f   : > { %2613 = vmatmul.mubr.msk.bf16.vlgmr.msra.gmra.mrb[4].mxu1 %vm910_vm2, %v3164_v10  ;;  %v1246_v21 = vsel %vm910_vm2, %v1241_v19, 0 }
 0x180   : > { %2623 = vmatpush3.bf16.xpose.msra.mxu1 %v1026_v16  ;;  %2624 = vmatprep.mubr.msk.bf16.mxu1 %vm2935_vm0, %v2934_v1 }
 0x181   : > { %2634 = vmatprep.subr.bf16.mxu1 %v2934_v1 }
 0x182   : > { %v1239_v22 = vpop.permute.xlu0 %1238 }
 0x187   : > { %2625 = vmatmul.mubr.msk.bf16.vlgmr.msra.gmra.mrb[8].mxu1 %vm910_vm2, %v1019_v15 }
 0x188   : > { %2635 = vmatpush3.bf16.xpose.msra.mxu1 %v1136_v18  ;;  %2636 = vmatprep.mubr.msk.bf16.mxu1 %vm2935_vm0, %v2934_v1 }
 0x189   : > { %2646 = vmatprep.subr.bf16.mxu1 %v2934_v1 }
 0x18f   : > { %2637 = vmatmul.mubr.msk.bf16.vlgmr.msra.gmra.mrb[12].mxu1 %vm910_vm2, %v1129_v20 }
 0x190   : > { %2647 = vmatpush3.bf16.xpose.msra.mxu1 %v1246_v21  ;;  %2648 = vmatprep.mubr.msk.bf16.mxu1 %vm2935_vm0, %v2934_v1 }
 0x191   : > { %2658 = vmatprep.subr.bf16.mxu1 %v2934_v1 }
 0x197   : > { %2649 = vmatmul.mubr.msk.bf16.vlgmr.msra.gmra.mrb[16].mxu1 %vm910_vm2, %v1239_v22 }
 0x198   : > { %2662 = vmatprep.mubr.msk.bf16.mxu1 %vm2935_vm0, %v2934_v1 }
 0x252   : > { %v951_v24 = vpop.f32.mrb[4].mxu1 }
 0x253   : > { %v952_v25 = vadd.f32 %v2492_v23, %v951_v24  ;;  %v2614_v26 = vpop.f32.mrb[5].mxu1 }
 0x254   : > { %v954_v27 = vpop.f32.mrb[6].mxu1 }
 0x255   : > { %v2615_v28 = vpop.f32.mrb[7].mxu1  ;;  %v957_v29 = vsel %vm910_vm2, %v952_v25, -inf }
 0x256   : > { %958 = vmax.xlane.f32.xlu1 %v957_v29 }
 0x25a   : > { %v1062_v30 = vpop.f32.mrb[8].mxu1 }
 0x25b   : > { %v1063_v31 = vadd.f32 %v2492_v23, %v1062_v30  ;;  %v2626_v32 = vpop.f32.mrb[9].mxu1 }
 0x25c   : > { %v1065_v33 = vpop.f32.mrb[10].mxu1 }
 0x25d   : > { %v2627_v34 = vpop.f32.mrb[11].mxu1  ;;  %v1068_v35 = vsel %vm910_vm2, %v1063_v31, -inf }
 0x25e   : > { %1069 = vmax.xlane.f32.xlu0 %v1068_v35 }
 0x262   : > { %v1172_v36 = vpop.f32.mrb[12].mxu1 }
 0x263   : > { %v1173_v37 = vadd.f32 %v2492_v23, %v1172_v36  ;;  %v2638_v38 = vpop.f32.mrb[13].mxu1 }
 0x264   : > { %v1175_v39 = vpop.f32.mrb[14].mxu1 }
 0x265   : > { %v2639_v40 = vpop.f32.mrb[15].mxu1  ;;  %v1178_v41 = vsel %vm910_vm2, %v1173_v37, -inf }
 0x266   : > { %1179 = vmax.xlane.f32.xlu0 %v1178_v41 }
 0x26a   : > { %v1282_v42 = vpop.f32.mrb[16].mxu1 }
 0x26b   : > { %v1283_v43 = vadd.f32 %v2492_v23, %v1282_v42  ;;  %v2650_v44 = vpop.f32.mrb[17].mxu1 }
 0x26c   : > { %v1285_v45 = vpop.f32.mrb[18].mxu1 }
 0x26d   : > { %v2651_v46 = vpop.f32.mrb[19].mxu1  ;;  %v1288_v47 = vsel %vm910_vm2, %v1283_v43, -inf }
 0x26e   : > { %1289 = vmax.xlane.f32.xlu1 %v1288_v47 }
 0x2e3   : > { %v959_v48 = vpop.xlane.xlu1 %958 }
 0x2e4   : > { %v960_v49 = vsub.f32 %v952_v25, %v959_v48 }
 0x2e6   : > { %v961_v50 = vmul.f32 1.442695, %v960_v49 }
 0x2e8   : > { %2830 = vpow2.f32 %v961_v50 }
 0x2eb   : > { %v1070_v51 = vpop.xlane.xlu0 %1069 }
 0x2ec   : > { %v1071_v52 = vsub.f32 %v1063_v31, %v1070_v51 }
 0x2ee   : > { %v1072_v53 = vmul.f32 1.442695, %v1071_v52 }
 0x2f0   : > { %2832 = vpow2.f32 %v1072_v53 }
 0x2f2   : > { %v2831_v54 = vpop.eup %2830 }
 0x2f3   : > { %v1180_v55 = vpop.xlane.xlu0 %1179  ;;  %v963_v56 = vsel %vm910_vm2, %v2831_v54, 0.0 }
 0x2f4   : > { %v1181_v57 = vsub.f32 %v1173_v37, %v1180_v55  ;;  %964 = vadd.xlane.f32.xlu0 %v963_v56 }
 0x2f6   : > { %v1182_v58 = vmul.f32 1.442695, %v1181_v57 }
 0x2f8   : > { %2834 = vpow2.f32 %v1182_v58 }
 0x2fa   : > { %v2833_v59 = vpop.eup %2832 }
 0x2fb   : > { %v1074_v60 = vsel %vm910_vm2, %v2833_v59, 0.0  ;;  %v1290_v63 = vpop.xlane.xlu1 %1289 }
 0x2fc   : > { %1075 = vadd.xlane.f32.xlu1 %v1074_v60  ;;  %v1291_v0 = vsub.f32 %v1283_v43, %v1290_v63  ;;  %v2818_v63 = vld [vmem:[%s3528_s12] sm:$0xff]  }
 0x2fe   : > { %v1292_v2 = vmul.f32 1.442695, %v1291_v0 }
 0x300   : > { %2836 = vpow2.f32 %v1292_v2 }
 0x302   : > { %v2835_v61 = vpop.eup %2834 }
 0x303   : > { %v1184_v62 = vsel %vm910_vm2, %v2835_v61, 0.0 }
 0x304   : > { %1185 = vadd.xlane.f32.xlu0 %v1184_v62 }
 0x30a   : > { %v2837_v4 = vpop.eup %2836 }
 0x30b   : > { %v1294_v5 = vsel %vm910_vm2, %v2837_v4, 0.0 }
 0x30d   : > { %1080 = vrot.lane.b32.xlu1 %v3164_v10, %s2943_s9  ;;  %s3561_s9 = smov 8  }
 0x31a   : > { %969 = vrot.lane.b32.xlu0 %v3164_v10, %s2944_s3  ;;  %s3558_s3 = smov 24  }
 0x31e   : > { %1300 = vrot.lane.b32.xlu0 %v3164_v10, %s2945_s6  ;;  %s3589_s6 = sld [smem:[#allocation16_spill]] }
 0x324   : > { %v2501_v55 = vld [vmem:[%s3589_s6] ss:$0 sm:$0xff]  ;;  %s2546_s6 = sshll.u32 %s3145_s8, 4 }
 0x331   : > { %1295 = vadd.xlane.f32.xlu1 %v1294_v5 }
 0x342   : > { %1190 = vrot.lane.b32.xlu1 %v3164_v10, %s3552_s26  ;;  %s3588_s26 = sld [smem:[#allocation15_spill]] }
 0x348   : > { %v2816_v38 = vld [vmem:[%s3588_s26] sm:$0xff]   ;;  %v2817_v39 = vld [vmem:[%s3588_s26 + $0x8] sm:$0xff]   ;;  %s3590_s26 = sld [smem:[#allocation10_spill]] }
 0x349   : > { %2659 = vmatpush3.bf16.msra.mxu1 %v2816_v38 }
 0x34a   : > { %2660 = vmatprep.subr.bf16.mxu1 %v2934_v1 }
 0x34d   : > { %2661 = vmatpush3.bf16.msra.mxu1 %v2817_v39 }
 0x34e   : > { %2674 = vmatprep.subr.bf16.mxu1 %v2934_v1 }
 0x381   : > { %v965_v6 = vpop.xlane.xlu0 %964 }
 0x382   : > { %2838 = vrcp.f32 %v965_v6 }
 0x389   : > { %v1076_v7 = vpop.xlane.xlu1 %1075 }
 0x38a   : > { %2840 = vrcp.f32 %v1076_v7 }
 0x38c   : > { %v2839_v8 = vpop.eup %2838 }
 0x38d   : > { %v967_v11 = vmul.f32 %v2839_v8, %v2831_v54  ;;  %v1081_v14 = vpop.permute.xlu1 %1080 }
 0x38e   : > { %v1086_v17 = vsel %vm974_vm3, %v1081_v14, 0 }
 0x38f   : > { %v968_v15 = vpack.c.bf16 %v967_v11, %v967_v11  ;;  %v2820_v11 = vld [vmem:[%s3591_s10] sm:$0xff]  }
 0x391   : > { %v1186_v9 = vpop.xlane.xlu0 %1185 }
 0x392   : > { %2842 = vrcp.f32 %v1186_v9 }
 0x394   : > { %v2841_v16 = vpop.eup %2840 }
 0x395   : > { %v970_v12 = vpop.permute.xlu0 %969  ;;  %v1078_v10 = vmul.f32 %v2841_v16, %v2833_v59 }
 0x396   : > { %v976_v13 = vsel %vm974_vm3, %v970_v12, 0  ;;  %v2821_v12 = vld [vmem:[%s3591_s10 + $0x8] sm:$0xff]  }
 0x397   : > { %2617 = vmatpush3.bf16.msra.mxu0 %v976_v13  ;;  %v1079_v18 = vpack.c.bf16 %v1078_v10, %v1078_v10 }
 0x398   : > { %2628 = vmatprep.subr.bf16.mxu0 %v2934_v1 }
 0x399   : > { %v1301_v24 = vpop.permute.xlu0 %1300 }
 0x39a   : > { %2619 = vmatmul.mubr.msk.bf16.vlgmr.msra.gmra.mrb[0].mxu0 %vm910_vm2, %v968_v15  ;;  %v1306_v26 = vsel %vm974_vm3, %v1301_v24, 0 }
 0x39b   : > { %2629 = vmatpush3.bf16.msra.mxu0 %v1086_v17  ;;  %2630 = vmatprep.mubr.msk.bf16.mxu0 %vm2935_vm0, %v2934_v1  ;;  %v2505_v17 = vld [vmem:[%s3592_s1] ss:$0 sm:$0xff]  ;;  %s3602_s1 = smov 88  }
 0x39c   : > { %2640 = vmatprep.subr.bf16.mxu0 %v2934_v1  ;;  %v2843_v19 = vpop.eup %2842 }
 0x39d   : > { %v1188_v21 = vmul.f32 %v2843_v19, %v2835_v61 }
 0x39f   : > { %v1189_v25 = vpack.c.bf16 %v1188_v21, %v1188_v21 }
 0x3a2   : > { %2631 = vmatmul.mubr.msk.bf16.vlgmr.msra.gmra.mrb[4].mxu0 %vm910_vm2, %v1079_v18 }
 0x3a3   : > { %2642 = vmatprep.mubr.msk.bf16.mxu0 %vm2935_vm0, %v2934_v1 }
 0x3be   : > { %v1296_v20 = vpop.xlane.xlu1 %1295 }
 0x3bf   : > { %2844 = vrcp.f32 %v1296_v20 }
 0x3c2   : > { %v1191_v22 = vpop.permute.xlu1 %1190 }
 0x3c3   : > { %v1196_v23 = vsel %vm974_vm3, %v1191_v22, 0  ;;  %v2511_v22 = vld [vmem:[%s3529_s13] ss:$0 sm:$0xff] }
 0x3c4   : > { %2641 = vmatpush3.bf16.msra.mxu0 %v1196_v23 }
 0x3c5   : > { %2652 = vmatprep.subr.bf16.mxu0 %v2934_v1 }
 0x3c7   : > { %2643 = vmatmul.mubr.msk.bf16.vlgmr.msra.gmra.mrb[8].mxu0 %vm910_vm2, %v1189_v25 }
 0x3c8   : > { %2653 = vmatpush3.bf16.msra.mxu0 %v1306_v26  ;;  %2654 = vmatprep.mubr.msk.bf16.mxu0 %vm2935_vm0, %v2934_v1 }
 0x3c9   : > { %v2845_v27 = vpop.eup %2844  ;;  %2666 = vmatprep.subr.bf16.mxu0 %v2934_v1 }
 0x3ca   : > { %v1298_v28 = vmul.f32 %v2845_v27, %v2837_v4 }
 0x3cc   : > { %v1299_v29 = vpack.c.bf16 %v1298_v28, %v1298_v28 }
 0x3cf   : > { %2655 = vmatmul.mubr.msk.bf16.vlgmr.msra.gmra.mrb[12].mxu0 %vm910_vm2, %v1299_v29 }
 0x3d0   : > { %2670 = vmatprep.mubr.msk.bf16.mxu0 %vm2935_vm0, %v2934_v1  ;;  %2667 = vmatpush3.bf16.msra.mxu0 %v2820_v11 }
 0x3d1   : > { %2668 = vmatprep.subr.bf16.mxu0 %v2934_v1 }
 0x3d4   : > { %2669 = vmatpush3.bf16.msra.mxu0 %v2821_v12 }
 0x3d5   : > { %2682 = vmatprep.subr.bf16.mxu0 %v2934_v1 }
 0x46d   : > { %v1012_v30 = vpop.f32.mrb[0].mxu0 }
 0x46e   : > { %v2620_v31 = vpop.f32.mrb[1].mxu0 }
 0x46f   : > { %v1015_v32 = vpop.f32.mrb[2].mxu0  ;;  %v2507_v31 = vld [vmem:[%s3597_s11] ss:$0 sm:$0xff] }
 0x470   : > { %v2621_v33 = vpop.f32.mrb[3].mxu0 }
 0x475   : > { %v1122_v34 = vpop.f32.mrb[4].mxu0 }
 0x476   : > { %1349 = vrot.lane.b32.xlu1 %v1122_v34, %s3561_s9  ;;  %v2632_v35 = vpop.f32.mrb[5].mxu0  ;;  %s3595_s9 = smov 112  }
 0x477   : > { %v1125_v36 = vpop.f32.mrb[6].mxu0 }
 0x478   : > { %v2633_v37 = vpop.f32.mrb[7].mxu0 }
 0x49a   : > { %v1232_v40 = vpop.f32.mrb[8].mxu0 }
 0x49b   : > { %1353 = vrot.lane.b32.xlu0 %v1232_v40, %s3559_s27  ;;  %v2644_v41 = vpop.f32.mrb[9].mxu0  ;;  %s808_s27 = scalar_lea.vmem %s3590_s26, %s2546_s6  ;;  %s3594_s26 = smov 120  }
 0x49c   : > { %v1235_v42 = vpop.f32.mrb[10].mxu0  ;;  %v821_v7 = vld [vmem:[%s808_s27] sm:$0xff]  ;;  %v822_v8 = vld [vmem:[%s808_s27 + $0x8] sm:$0xff]  ;;  %s3593_s27 = sld [smem:[#allocation18_spill]] }
 0x49d   : > { %v2645_v43 = vpop.f32.mrb[11].mxu0  ;;  %v1523_v9 = vpack.c.bf16 %v822_v8, %v821_v7 }
 0x4a2   : > { %v1342_v44 = vpop.f32.mrb[12].mxu0  ;;  %v2506_v18 = vld [vmem:[%s3593_s27] ss:$0 sm:$0xff]  ;;  %s3603_s27 = smov 8  }
 0x4a3   : > { %1357 = vrot.lane.b32.xlu1 %v1342_v44, %s3558_s3  ;;  %v2656_v45 = vpop.f32.mrb[13].mxu0  ;;  %s3598_s3 = sld [smem:[#allocation12_spill]] }
 0x4a4   : > { %v1345_v46 = vpop.f32.mrb[14].mxu0 }
 0x4a5   : > { %v2657_v47 = vpop.f32.mrb[15].mxu0 }
 0x4a9   : > { %s814_s0 = scalar_lea.vmem %s3598_s3, %s3145_s8  ;;  %s2950_s3 = smov 32  }
 0x4aa   : > { %v2515_v47 = vld [vmem:[%s814_s0] ss:$0 sm:$0xff]  ;;  %s3607_s0 = sshll.u32 %s3145_s8, 3  ;;  %s791_s8 = sand.u32 1, %s2924_s2  }
 0x4e8   : > { %v1350_v48 = vpop.permute.xlu1 %1349 }
 0x4e9   : > { %v1360_v50 = vsel %vm910_vm2, %v1012_v30, %v1350_v48 }
 0x50d   : > { %v1354_v49 = vpop.permute.xlu0 %1353 }
 0x50e   : > { %v1362_v51 = vsel %vm1361_vm4, %v1360_v50, %v1354_v49 }
 0x515   : > { %v1358_v52 = vpop.permute.xlu1 %1357 }
 0x516   : > { %v1364_v53 = vsel %vm1363_vm5, %v1362_v51, %v1358_v52 }
 0x517   : > { %v1365_v54 = vpack.c.bf16 %v1364_v53, %v1364_v53 }
 0x519   : > { %2663 = vmatmul.mubr.msk.bf16.vlgmr.msra.gmra.mrb[20].mxu1 %vm849_vm1, %v1365_v54 }
 0x51a   : > { %2678 = vmatprep.mubr.msk.bf16.mxu1 %vm2935_vm0, %v2934_v1  ;;  %2675 = vmatpush3.bf16.msra.mxu1 %v2818_v63 }
 0x51b   : > { %2676 = vmatprep.subr.bf16.mxu1 %v2934_v1 }
 0x5ec   : > { %v1421_v56 = vpop.f32.mrb[20].mxu1 }
 0x5ed   : > { %v1422_v57 = vadd.f32 %v2501_v55, %v1421_v56  ;;  %v2664_v58 = vpop.f32.mrb[21].mxu1 }
 0x5ee   : > { %v1424_v59 = vpop.f32.mrb[22].mxu1 }
 0x5ef   : > { %v2665_v60 = vpop.f32.mrb[23].mxu1  ;;  %v1427_v61 = vadd.f32 %v1422_v57, %v3154_v3  ;;  %v2819_v3 = vld [vmem:[%s3528_s12 + $0x8] sm:$0xff]  }
 0x5f0   : > { %2677 = vmatpush3.bf16.msra.mxu1 %v2819_v3 }
 0x5f1   : > { %v1428_v62 = vsel %vm849_vm1, %v1427_v61, 0.0  ;;  %2688 = vmatprep.subr.bf16.mxu1 %v2934_v1 }
 0x5f2   : > { %1429 = vadd.xlane.f32.xlu0 %v1428_v62 }
 0x5f3   : > { %2679 = vmatmul.mubr.msk.bf16.vlgmr.msra.gmra.mrb[24].mxu1 %vm849_vm1, %v1523_v9 }
 0x5f4   : > { %2690 = vmatprep.mubr.msk.bf16.mxu1 %vm2935_vm0, %v2934_v1 }
 0x67f   : > { %v1430_v0 = vpop.xlane.xlu0 %1429 }
 0x680   : > { %v1432_v2 = vmul.f32 0.03125, %v1430_v0 }
 0x682   : > { %v1433_v4 = vsub.f32 %v1427_v61, %v1432_v2 }
 0x684   : > { %v1434_v5 = vmul.f32 %v1433_v4, %v1433_v4 }
 0x686   : > { %v1435_v6 = vsel %vm849_vm1, %v1434_v5, 0.0 }
 0x687   : > { %1436 = vadd.xlane.f32.xlu1 %v1435_v6 }
 0x6c6   : > { %v1584_v23 = vpop.f32.mrb[24].mxu1 }
 0x6c7   : > { %v1585_v24 = vadd.f32 %v2511_v22, %v1584_v23  ;;  %v2680_v25 = vpop.f32.mrb[25].mxu1 }
 0x6c8   : > { %v1587_v26 = vpop.f32.mrb[26].mxu1 }
 0x6c9   : > { %v1588_v27 = vadd.f32 %v2511_v22, %v1587_v26  ;;  %v2681_v28 = vpop.f32.mrb[27].mxu1 }
 0x6cb   : > { %v3300_v29 = vpack.c.bf16 %v1588_v27, %v1585_v24 }
 0x6cd   : > { %1714 = vrot.lane.b32.xlu0 %v3300_v29, %s3594_s26  ;;  %v1610_v30 = vsel %vm910_vm2, %v3300_v29, 0 }
 0x6d1   : > { %1822 = vrot.lane.b32.xlu0 %v3300_v29, %s3595_s9 }
 0x6d5   : > { %1930 = vrot.lane.b32.xlu0 %v3300_v29, %s3596_s5 }
 0x714   : > { %v1437_v13 = vpop.xlane.xlu1 %1436 }
 0x715   : > { %v1438_v14 = vmul.f32 0.03125, %v1437_v13 }
 0x717   : > { %v1439_v15 = vadd.f32 1e-12, %v1438_v14 }
 0x719   : > { %2846 = vrsqrt.f32 %v1439_v15 }
 0x723   : > { %v2847_v16 = vpop.eup %2846 }
 0x724   : > { %v1441_v10 = vmul.f32 %v2847_v16, %v1433_v4 }
 0x726   : > { %v1448_v19 = vmul.f32 %v2505_v17, %v1441_v10 }
 0x728   : > { %v3290_v20 = vadd.f32 %v2506_v18, %v1448_v19 }
 0x72a   : > { %v1456_v21 = vpack.c.bf16 %v3290_v20, %v3290_v20 }
 0x72c   : > { %2671 = vmatmul.mubr.msk.bf16.vlgmr.msra.gmra.mrb[16].mxu0 %vm849_vm1, %v1456_v21 }
 0x72d   : > { %2684 = vmatprep.mubr.msk.bf16.mxu0 %vm2935_vm0, %v2934_v1  ;;  %2683 = vmatpush3.bf16.xpose.msra.mxu0 %v1610_v30 }
 0x72e   : > { %2694 = vmatprep.subr.bf16.mxu0 %v2934_v1 }
 0x73f   : > { %v1715_v36 = vpop.permute.xlu0 %1714 }
 0x740   : > { %v1720_v39 = vsel %vm910_vm2, %v1715_v36, 0 }
 0x743   : > { %v1823_v40 = vpop.permute.xlu0 %1822 }
 0x744   : > { %v1828_v42 = vsel %vm910_vm2, %v1823_v40, 0 }
 0x747   : > { %v1931_v43 = vpop.permute.xlu0 %1930 }
 0x748   : > { %v1936_v45 = vsel %vm910_vm2, %v1931_v43, 0 }
 0x7ff   : > { %v1517_v32 = vpop.f32.mrb[16].mxu0 }
 0x800   : > { %v1518_v33 = vadd.f32 %v2507_v31, %v1517_v32  ;;  %v2672_v34 = vpop.f32.mrb[17].mxu0 }
 0x801   : > { %v1520_v35 = vpop.f32.mrb[18].mxu0 }
 0x802   : > { %v1598_v37 = vpack.c.bf16 %v1518_v33, %v1518_v33  ;;  %v2673_v38 = vpop.f32.mrb[19].mxu0 }
 0x804   : > { %1712 = vrot.lane.b32.xlu1 %v1598_v37, %s3594_s26  ;;  %2685 = vmatmul.mubr.msk.bf16.vlgmr.msra.gmra.mrb[20].mxu0 %vm910_vm2, %v1598_v37  ;;  %s3599_s26 = smov 96  }
 0x805   : > { %2695 = vmatpush3.bf16.xpose.msra.mxu0 %v1720_v39  ;;  %2696 = vmatprep.mubr.msk.bf16.mxu0 %vm2935_vm0, %v2934_v1 }
 0x806   : > { %2706 = vmatprep.subr.bf16.mxu0 %v2934_v1 }
 0x808   : > { %1820 = vrot.lane.b32.xlu1 %v1598_v37, %s3595_s9  ;;  %s3600_s9 = smov 80  }
 0x80c   : > { %1928 = vrot.lane.b32.xlu1 %v1598_v37, %s3596_s5  ;;  %s3601_s5 = smov 72  }
 0x876   : > { %v1713_v41 = vpop.permute.xlu1 %1712 }
 0x877   : > { %2697 = vmatmul.mubr.msk.bf16.vlgmr.msra.gmra.mrb[24].mxu0 %vm910_vm2, %v1713_v41 }
 0x878   : > { %2707 = vmatpush3.bf16.xpose.msra.mxu0 %v1828_v42  ;;  %2708 = vmatprep.mubr.msk.bf16.mxu0 %vm2935_vm0, %v2934_v1 }
 0x879   : > { %2718 = vmatprep.subr.bf16.mxu0 %v2934_v1 }
 0x87a   : > { %v1821_v44 = vpop.permute.xlu1 %1820 }
 0x87e   : > { %v1929_v46 = vpop.permute.xlu1 %1928 }
 0x87f   : > { %2709 = vmatmul.mubr.msk.bf16.vlgmr.msra.gmra.mrb[28].mxu0 %vm910_vm2, %v1821_v44 }
 0x880   : > { %2719 = vmatpush3.bf16.xpose.msra.mxu0 %v1936_v45  ;;  %2720 = vmatprep.mubr.msk.bf16.mxu0 %vm2935_vm0, %v2934_v1 }
 0x881   : > { %2730 = vmatprep.subr.bf16.mxu0 %v2934_v1 }
 0x887   : > { %2721 = vmatmul.mubr.msk.bf16.vlgmr.msra.gmra.mrb[32].mxu0 %vm910_vm2, %v1929_v46 }
 0x888   : > { %2734 = vmatprep.mubr.msk.bf16.mxu0 %vm2935_vm0, %v2934_v1 }
 0x8d7   : > { %v1646_v48 = vpop.f32.mrb[20].mxu0 }
 0x8d8   : > { %v3339_v49 = vadd.f32 %v2515_v47, %v1646_v48  ;;  %v2686_v50 = vpop.f32.mrb[21].mxu0 }
 0x8d9   : > { %v1649_v51 = vpop.f32.mrb[22].mxu0 }
 0x8da   : > { %v2687_v52 = vpop.f32.mrb[23].mxu0  ;;  %v1652_v53 = vsel %vm1361_vm4, %v3339_v49, -inf }
 0x8db   : > { %1653 = vmax.xlane.f32.xlu0 %v1652_v53 }
 0x94a   : > { %v1756_v54 = vpop.f32.mrb[24].mxu0 }
 0x94b   : > { %v3343_v55 = vadd.f32 %v2515_v47, %v1756_v54  ;;  %v2698_v56 = vpop.f32.mrb[25].mxu0 }
 0x94c   : > { %v1759_v57 = vpop.f32.mrb[26].mxu0  ;;  %v2822_v56 = vld [vmem:[%s3530_s14] sm:$0xff]  }
 0x94d   : > { %v2699_v58 = vpop.f32.mrb[27].mxu0  ;;  %v1762_v59 = vsel %vm1361_vm4, %v3343_v55, -inf  ;;  %2731 = vmatpush3.bf16.msra.mxu0 %v2822_v56  ;;  %v2534_v56 = vld [vmem:[%s3537_s21] ss:$0 sm:$0xff] }
 0x94e   : > { %1763 = vmax.xlane.f32.xlu1 %v1762_v59  ;;  %2732 = vmatprep.subr.bf16.mxu0 %v2934_v1 }
 0x952   : > { %v1864_v60 = vpop.f32.mrb[28].mxu0 }
 0x953   : > { %v3347_v61 = vadd.f32 %v2515_v47, %v1864_v60  ;;  %v2710_v62 = vpop.f32.mrb[29].mxu0 }
 0x954   : > { %v1867_v63 = vpop.f32.mrb[30].mxu0  ;;  %v2823_v62 = vld [vmem:[%s3530_s14 + $0x8] sm:$0xff]  }
 0x955   : > { %v2711_v0 = vpop.f32.mrb[31].mxu0  ;;  %v1870_v2 = vsel %vm1361_vm4, %v3347_v61, -inf  ;;  %2733 = vmatpush3.bf16.msra.mxu0 %v2823_v62 }
 0x956   : > { %1871 = vmax.xlane.f32.xlu0 %v1870_v2  ;;  %2746 = vmatprep.subr.bf16.mxu0 %v2934_v1 }
 0x95a   : > { %v1972_v4 = vpop.f32.mrb[32].mxu0 }
 0x95b   : > { %v3351_v5 = vadd.f32 %v2515_v47, %v1972_v4  ;;  %v2722_v6 = vpop.f32.mrb[33].mxu0 }
 0x95c   : > { %v1975_v3 = vpop.f32.mrb[34].mxu0 }
 0x95d   : > { %v2723_v7 = vpop.f32.mrb[35].mxu0  ;;  %v1978_v8 = vsel %vm1361_vm4, %v3351_v5, -inf }
 0x95e   : > { %1979 = vmax.xlane.f32.xlu0 %v1978_v8 }
 0x968   : > { %v1654_v9 = vpop.xlane.xlu0 %1653 }
 0x969   : > { %v1655_v11 = vsub.f32 %v3339_v49, %v1654_v9 }
 0x96b   : > { %v1656_v12 = vmul.f32 1.442695, %v1655_v11 }
 0x96d   : > { %2848 = vpow2.f32 %v1656_v12 }
 0x977   : > { %v2849_v13 = vpop.eup %2848 }
 0x978   : > { %v1658_v14 = vsel %vm1361_vm4, %v2849_v13, 0.0 }
 0x979   : > { %1659 = vadd.xlane.f32.xlu1 %v1658_v14 }
 0x98a   : > { %1665 = vrot.lane.b32.xlu1 %v3300_v29, %s3599_s26  ;;  %s3604_s26 = smov 16  }
 0x9db   : > { %v1764_v15 = vpop.xlane.xlu1 %1763 }
 0x9dc   : > { %v1765_v16 = vsub.f32 %v3343_v55, %v1764_v15 }
 0x9de   : > { %v1766_v17 = vmul.f32 1.442695, %v1765_v16 }
 0x9e0   : > { %2850 = vpow2.f32 %v1766_v17  ;;  %v2524_v17 = vld [vmem:[%s3531_s15] ss:$0 sm:$0xff] }
 0x9e3   : > { %v1872_v10 = vpop.xlane.xlu0 %1871 }
 0x9e4   : > { %v1873_v18 = vsub.f32 %v3347_v61, %v1872_v10 }
 0x9e6   : > { %v1874_v19 = vmul.f32 1.442695, %v1873_v18 }
 0x9e8   : > { %2852 = vpow2.f32 %v1874_v19 }
 0x9ea   : > { %v2851_v21 = vpop.eup %2850 }
 0x9eb   : > { %v1980_v22 = vpop.xlane.xlu0 %1979  ;;  %v1768_v23 = vsel %vm1361_vm4, %v2851_v21, 0.0 }
 0x9ec   : > { %v1981_v24 = vsub.f32 %v3351_v5, %v1980_v22  ;;  %1769 = vadd.xlane.f32.xlu0 %v1768_v23 }
 0x9ee   : > { %v1982_v25 = vmul.f32 1.442695, %v1981_v24 }
 0x9f0   : > { %2854 = vpow2.f32 %v1982_v25 }
 0x9f2   : > { %v2853_v26 = vpop.eup %2852 }
 0x9f3   : > { %v1876_v27 = vsel %vm1361_vm4, %v2853_v26, 0.0 }
 0x9f4   : > { %1877 = vadd.xlane.f32.xlu1 %v1876_v27 }
 0x9fa   : > { %v2855_v28 = vpop.eup %2854 }
 0x9fb   : > { %v1984_v30 = vsel %vm1361_vm4, %v2855_v28, 0.0 }
 0x9fc   : > { %1985 = vadd.xlane.f32.xlu0 %v1984_v30 }
 0xa05   : > { %1882 = vrot.lane.b32.xlu1 %v3300_v29, %s3600_s9  ;;  %s3605_s9 = smov 24  }
 0xa06   : > { %v1660_v31 = vpop.xlane.xlu1 %1659 }
 0xa07   : > { %2856 = vrcp.f32 %v1660_v31  ;;  %v2825_v31 = vld [vmem:[%s3534_s18 + $0x8] sm:$0xff]  }
 0xa09   : > { %1990 = vrot.lane.b32.xlu1 %v3300_v29, %s3601_s5  ;;  %s818_s5 = scalar_lea.vmem %s3541_s25, %s3607_s0  ;;  %s2543_s0 = sshll.u32 %s3103_s7, 7 }
 0xa0a   : > { %v1666_v32 = vpop.permute.xlu1 %1665  ;;  %s3473_s11 = scalar_lea.hbm %s3540_s24, %s2543_s0  ;;  %s2951_s7 = smov [#allocation2]  }
 0xa0b   : > { %2689 = vmatpush3.bf16.msra.mxu1 %v1666_v32 }
 0xa0c   : > { %2700 = vmatprep.subr.bf16.mxu1 %v2934_v1 }
 0xa11   : > { %v2857_v33 = vpop.eup %2856 }
 0xa12   : > { %v1662_v34 = vmul.f32 %v2857_v33, %v2849_v13  ;;  %1774 = vrot.lane.b32.xlu0 %v3300_v29, %s3602_s1  ;;  %s2483_s1 = sshll.u32 %s791_s8, 3 }
 0xa14   : > { %v1663_v35 = vpack.c.bf16 %v1662_v34, %v1662_v34  ;;  %v2528_v34 = vld [vmem:[%s3532_s16] ss:$0 sm:$0xff] }
 0xa16   : > { %2691 = vmatmul.mubr.msk.bf16.vlgmr.msra.gmra.mrb[28].mxu1 %vm1361_vm4, %v1663_v35 }
 0xa17   : > { %2702 = vmatprep.mubr.msk.bf16.mxu1 %vm2935_vm0, %v2934_v1 }
 0xa79   : > { %v1770_v36 = vpop.xlane.xlu0 %1769 }
 0xa7a   : > { %2858 = vrcp.f32 %v1770_v36  ;;  %v2529_v36 = vld [vmem:[%s3533_s17] ss:$0 sm:$0xff] }
 0xa81   : > { %v1878_v37 = vpop.xlane.xlu1 %1877 }
 0xa82   : > { %2860 = vrcp.f32 %v1878_v37 }
 0xa84   : > { %v2859_v38 = vpop.eup %2858 }
 0xa85   : > { %v1772_v40 = vmul.f32 %v2859_v38, %v2851_v21  ;;  %v1883_v43 = vpop.permute.xlu1 %1882 }
 0xa87   : > { %v1773_v42 = vpack.c.bf16 %v1772_v40, %v1772_v40  ;;  %v2826_v40 = vld [vmem:[%s3536_s20] sm:$0xff]  }
 0xa89   : > { %v1986_v39 = vpop.xlane.xlu0 %1985  ;;  %v1991_v47 = vpop.permute.xlu1 %1990 }
 0xa8a   : > { %2862 = vrcp.f32 %v1986_v39 }
 0xa8c   : > { %v2861_v29 = vpop.eup %2860 }
 0xa8d   : > { %v1775_v41 = vpop.permute.xlu0 %1774  ;;  %v1880_v44 = vmul.f32 %v2861_v29, %v2853_v26  ;;  %v2829_v29 = vld [vmem:[%s3536_s20 + $0x18] sm:$0xff]  }
 0xa8e   : > { %2701 = vmatpush3.bf16.msra.mxu1 %v1775_v41  ;;  %v2827_v41 = vld [vmem:[%s3536_s20 + $0x8] sm:$0xff]  }
 0xa8f   : > { %2712 = vmatprep.subr.bf16.mxu1 %v2934_v1  ;;  %v1881_v45 = vpack.c.bf16 %v1880_v44, %v1880_v44 }
 0xa91   : > { %2703 = vmatmul.mubr.msk.bf16.vlgmr.msra.gmra.mrb[32].mxu1 %vm1361_vm4, %v1773_v42  ;;  %v2828_v42 = vld [vmem:[%s3536_s20 + $0x10] sm:$0xff]  }
 0xa92   : > { %2713 = vmatpush3.bf16.msra.mxu1 %v1883_v43  ;;  %2714 = vmatprep.mubr.msk.bf16.mxu1 %vm2935_vm0, %v2934_v1  ;;  %v2530_v43 = vld [vmem:[%s3535_s19] ss:$0 sm:$0xff] }
 0xa93   : > { %2724 = vmatprep.subr.bf16.mxu1 %v2934_v1 }
 0xa94   : > { %v2863_v46 = vpop.eup %2862 }
 0xa95   : > { %v1988_v48 = vmul.f32 %v2863_v46, %v2855_v28 }
 0xa97   : > { %v1989_v50 = vpack.c.bf16 %v1988_v48, %v1988_v48 }
 0xa99   : > { %2715 = vmatmul.mubr.msk.bf16.vlgmr.msra.gmra.mrb[36].mxu1 %vm1361_vm4, %v1881_v45 }
 0xa9a   : > { %2725 = vmatpush3.bf16.msra.mxu1 %v1991_v47  ;;  %2726 = vmatprep.mubr.msk.bf16.mxu1 %vm2935_vm0, %v2934_v1 }
 0xa9b   : > { %2738 = vmatprep.subr.bf16.mxu1 %v2934_v1 }
 0xaa1   : > { %2727 = vmatmul.mubr.msk.bf16.vlgmr.msra.gmra.mrb[40].mxu1 %vm1361_vm4, %v1989_v50 }
 0xaa2   : > { %2742 = vmatprep.mubr.msk.bf16.mxu1 %vm2935_vm0, %v2934_v1 }
 0xae9   : > { %v1705_v51 = vpop.f32.mrb[28].mxu1 }
 0xaea   : > { %v2692_v52 = vpop.f32.mrb[29].mxu1 }
 0xaeb   : > { %v1708_v53 = vpop.f32.mrb[30].mxu1 }
 0xaec   : > { %v2693_v54 = vpop.f32.mrb[31].mxu1 }
 0xb64   : > { %v1814_v57 = vpop.f32.mrb[32].mxu1 }
 0xb65   : > { %2037 = vrot.lane.b32.xlu0 %v1814_v57, %s3603_s27  ;;  %v2704_v58 = vpop.f32.mrb[33].mxu1 }
 0xb66   : > { %v1817_v59 = vpop.f32.mrb[34].mxu1 }
 0xb67   : > { %v2705_v60 = vpop.f32.mrb[35].mxu1 }
 0xb6c   : > { %v1922_v63 = vpop.f32.mrb[36].mxu1 }
 0xb6d   : > { %2041 = vrot.lane.b32.xlu1 %v1922_v63, %s3604_s26  ;;  %v2716_v0 = vpop.f32.mrb[37].mxu1 }
 0xb6e   : > { %v1925_v2 = vpop.f32.mrb[38].mxu1 }
 0xb6f   : > { %v2717_v4 = vpop.f32.mrb[39].mxu1 }
 0xb74   : > { %v2030_v6 = vpop.f32.mrb[40].mxu1 }
 0xb75   : > { %2045 = vrot.lane.b32.xlu0 %v2030_v6, %s3605_s9  ;;  %v2728_v3 = vpop.f32.mrb[41].mxu1 }
 0xb76   : > { %v2033_v7 = vpop.f32.mrb[42].mxu1 }
 0xb77   : > { %v2729_v8 = vpop.f32.mrb[43].mxu1 }
 0xbd7   : > { %v2038_v9 = vpop.permute.xlu0 %2037 }
 0xbd8   : > { %v2048_v12 = vsel %vm910_vm2, %v1705_v51, %v2038_v9 }
 0xbdf   : > { %v2042_v11 = vpop.permute.xlu1 %2041 }
 0xbe0   : > { %v2049_v13 = vsel %vm1361_vm4, %v2048_v12, %v2042_v11 }
 0xbe7   : > { %v2046_v14 = vpop.permute.xlu0 %2045 }
 0xbe8   : > { %v2050_v15 = vsel %vm1363_vm5, %v2049_v13, %v2046_v14 }
 0xbe9   : > { %v2051_v16 = vpack.c.bf16 %v2050_v15, %v2050_v15 }
 0xbeb   : > { %2735 = vmatmul.mubr.msk.bf16.vlgmr.msra.gmra.mrb[36].mxu0 %vm849_vm1, %v2051_v16 }
 0xbec   : > { %2754 = vmatprep.mubr.msk.bf16.mxu0 %vm2935_vm0, %v2934_v1  ;;  %2747 = vmatpush3.bf16.msra.mxu0 %v2826_v40 }
 0xbed   : > { %2748 = vmatprep.subr.bf16.mxu0 %v2934_v1 }
 0xbf0   : > { %2749 = vmatpush3.bf16.msra.mxu0 %v2827_v41 }
 0xbf1   : > { %2750 = vmatprep.subr.bf16.mxu0 %v2934_v1 }
 0xbf4   : > { %2751 = vmatpush3.bf16.msra.mxu0 %v2828_v42 }
 0xbf5   : > { %2752 = vmatprep.subr.bf16.mxu0 %v2934_v1 }
 0xbf8   : > { %2753 = vmatpush3.bf16.msra.mxu0 %v2829_v29 }
 0xcbe   : > { %v2107_v10 = vpop.f32.mrb[36].mxu0 }
 0xcbf   : > { %v2108_v18 = vadd.f32 %v2524_v17, %v2107_v10  ;;  %v2736_v19 = vpop.f32.mrb[37].mxu0  ;;  %v2540_v17 = vld [vmem:[%s3538_s22] ss:$0 sm:$0xff] }
 0xcc0   : > { %v2110_v21 = vpop.f32.mrb[38].mxu0 }
 0xcc1   : > { %v2737_v22 = vpop.f32.mrb[39].mxu0  ;;  %v2113_v23 = vadd.f32 %v2108_v18, %v3290_v20  ;;  %v2824_v20 = vld [vmem:[%s3534_s18] sm:$0xff]  }
 0xcc2   : > { %2739 = vmatpush3.bf16.msra.mxu1 %v2824_v20  ;;  %v2541_v18 = vld [vmem:[%s3539_s23] ss:$0 sm:$0xff] }
 0xcc3   : > { %v2114_v24 = vsel %vm849_vm1, %v2113_v23, 0.0  ;;  %2740 = vmatprep.subr.bf16.mxu1 %v2934_v1 }
 0xcc4   : > { %2115 = vadd.xlane.f32.xlu1 %v2114_v24 }
 0xcc6   : > { %2741 = vmatpush3.bf16.msra.mxu1 %v2825_v31 }
 0xcd5   : > { %2142 = vrot.lane.b32.xlu1 %v3343_v55, %s3604_s26  ;;  %s793_s26 = scalar_lea.vmem [#allocation2], %s2483_s1  ;;  %s2874_s1 = sshll.u32 %s2951_s7, 4  ;;  %s2875_s1 = int_to_ptr.vmem [resolvable:$false] %s2874_s1 }
 0xcd6   : > { %s2363_s9 = sshll.u32 %s793_s26, 4  ;;  %s2876_s27 = scalar_lea.vmem %s2875_s1, 256  ;;  %s3475_s9 = int_to_ptr.vmem [resolvable:$true] %s2363_s9 }
 0xcd7   : > { %s2870_s6 = scalar_lea.vmem %s3475_s9, 128  ;;  %p2877_p0 = scmp.lt.s32.totalorder %s3475_s9, %s2875_s1 }
 0xcd8   : > { %p2871_p11 = scmp.ne.s32.totalorder %s3475_s9, %s2870_s6  ;;  %p2878_p1 = scmp.lt.s32.totalorder %s2876_s27, %s2870_s6 }
 0xcd9   : > { %2150 = vrot.lane.b32.xlu1 %v3351_v5, %s3606_s28  ;;  %s2346_s28 = scalar_lea.sflag [#allocation3], %s791_s8 }
 0xcda   : > { %p2872_p12 = pnand %p2871_p11, %p3120_p5  ;;  %p2879_p2 = por %p2878_p1, %p2877_p0 }
 0xcdc   : > { %p2873_p13 = pneg %p2872_p12 }
 0xcde   : > { %p2880_p3 = pnand %p2879_p2, %p2873_p13 }
 0xd51   : > { %v2116_v25 = vpop.xlane.xlu1 %2115 }
 0xd52   : > { %v2117_v26 = vmul.f32 0.03125, %v2116_v25 }
 0xd54   : > { %v2118_v27 = vsub.f32 %v2113_v23, %v2117_v26 }
 0xd55   : > { %v2143_v2 = vpop.permute.xlu1 %2142 }
 0xd56   : > { %v2119_v28 = vmul.f32 %v2118_v27, %v2118_v27  ;;  %v2153_v7 = vsel %vm1361_vm4, %v3339_v49, %v2143_v2 }
 0xd58   : > { %v2120_v30 = vsel %vm849_vm1, %v2119_v28, 0.0 }
 0xd59   : > { %2121 = vadd.xlane.f32.xlu0 %v2120_v30  ;;  %v2151_v9 = vpop.permute.xlu1 %2150 }
 0xde6   : > { %v2122_v55 = vpop.xlane.xlu0 %2121 }
 0xde7   : > { %v2123_v5 = vmul.f32 0.03125, %v2122_v55 }
 0xde9   : > { %v2124_v32 = vadd.f32 1e-12, %v2123_v5 }
 0xdeb   : > { %2864 = vrsqrt.f32 %v2124_v32 }
 0xdf5   : > { %v2865_v33 = vpop.eup %2864 }
 0xdf6   : > { %v2126_v35 = vmul.f32 %v2865_v33, %v2118_v27 }
 0xdf8   : > { %v2133_v37 = vmul.f32 %v2528_v34, %v2126_v35 }
 0xdfa   : > { %v2140_v38 = vadd.f32 %v2529_v36, %v2133_v37 }
 0xdfc   : > { %v2159_v39 = vpack.c.bf16 %v2140_v38, %v2140_v38 }
 0xdfe   : > { %2743 = vmatmul.mubr.msk.bf16.vlgmr.msra.gmra.mrb[44].mxu1 %vm849_vm1, %v2159_v39 }
 0xed1   : > { %v2220_v44 = vpop.f32.mrb[44].mxu1 }
 0xed2   : > { %v2221_v45 = vadd.f32 %v2530_v43, %v2220_v44  ;;  %v2744_v46 = vpop.f32.mrb[45].mxu1 }
 0xed3   : > { %v2223_v47 = vpop.f32.mrb[46].mxu1 }
 0xed4   : > { %v2227_v48 = vmul.f32 0.70710677, %v2221_v45  ;;  %v2745_v50 = vpop.f32.mrb[47].mxu1  ;;  %v2226_v52 = vmul.f32 0.5, %v2221_v45 }
 0xed6   : > { %2866 = verf.f32 %v2227_v48 }
 0xee0   : > { %v2867_v51 = vpop.eup %2866 }
 0xee1   : > { %v2229_v53 = vadd.f32 1.0, %v2867_v51 }
 0xee3   : > { %v2230_v1 = vmul.f32 %v2229_v53, %v2226_v52 }
 0xee5   : > { %v2231_v54 = vpack.c.bf16 %v2230_v1, %v2230_v1 }
 0xee7   : > { %2755 = vmatmul.mubr.msk.bf16.vlgmr.msra.gmra.mrb[40].mxu0 %vm2157_vm6, %v2231_v54 }
 0xfba   : > { %v2308_v57 = vpop.f32.mrb[40].mxu0 }
 0xfbb   : > { %v2309_v58 = vadd.f32 %v2534_v56, %v2308_v57  ;;  %v2756_v59 = vpop.f32.mrb[41].mxu0 }
 0xfbc   : > { %v2311_v60 = vpop.f32.mrb[42].mxu0 }
 0xfbd   : > { %v2757_v62 = vpop.f32.mrb[43].mxu0  ;;  %v2314_v63 = vadd.f32 %v2309_v58, %v2140_v38 }
 0xfbf   : > { %v2317_v0 = vsel %vm849_vm1, %v2314_v63, 0.0 }
 0xfc0   : > { %2318 = vadd.xlane.f32.xlu0 %v2317_v0 }
 0xfd6   : > { %2146 = vrot.lane.b32.xlu0 %v3347_v61, %s2950_s3 }
0x104d   : > { %v2319_v4 = vpop.xlane.xlu0 %2318 }
0x104e   : > { %v2320_v6 = vmul.f32 0.03125, %v2319_v4 }
0x1050   : > { %v2321_v3 = vsub.f32 %v2314_v63, %v2320_v6 }
0x1051   : > { %v2147_v8 = vpop.permute.xlu0 %2146 }
0x1052   : > { %v2154_v11 = vsel %vm849_vm1, %v2153_v7, %v2147_v8  ;;  %v2322_v61 = vmul.f32 %v2321_v3, %v2321_v3 }
0x1053   : > { %v2156_v12 = vsel %vm2155_vm7, %v2154_v11, %v2151_v9 }
0x1054   : > { %2158 = vst.msk [vmem:[%s818_s5] sm:$0xff] %vm2157_vm6, %v2156_v12  ;;  %v2323_v13 = vsel %vm849_vm1, %v2322_v61, 0.0 }
0x1055   : > { %2324 = vadd.xlane.f32.xlu1 %v2323_v13 }
0x10e2   : > { %v2325_v14 = vpop.xlane.xlu1 %2324 }
0x10e3   : > { %v2326_v15 = vmul.f32 0.03125, %v2325_v14 }
0x10e5   : > { %v2327_v49 = vadd.f32 1e-12, %v2326_v15 }
0x10e7   : > { %2868 = vrsqrt.f32 %v2327_v49 }
0x10f1   : > { %v2869_v16 = vpop.eup %2868 }
0x10f2   : > { %v2329_v10 = vmul.f32 %v2869_v16, %v2321_v3 }
0x10f4   : > { %v2336_v19 = vmul.f32 %v2540_v17, %v2329_v10 }
0x10f6   : > { %v2343_v21 = vadd.f32 %v2541_v18, %v2336_v19 }
0x10f8   : > { %2344 = vst.msk [vmem:[%s793_s26] sm:$0xff] %vm849_vm1, %v2343_v21 }
0x10f9   : > { %2883 = shalt.err (!%p2880_p3)
}
0x10fa   : > { %s2884_s10 = scalar_lea.hbm %s3473_s11, 128  ;;  %s2888_s0 = scalar_lea.hbm %s3540_s24, 256 }
0x10fb   : > { %p2885_p4 = scmp.ne.s32.totalorder %s3473_s11, %s2884_s10  ;;  %p2889_p9 = scmp.lt.u32.totalorder %s3473_s11, %s3540_s24 }
0x10fc   : > { %p2890_p10 = scmp.lt.u32.totalorder %s2888_s0, %s2884_s10  ;;  %p2892_p12 = scmp.lt.u32.totalorder %s2884_s10, %s3473_s11 }
0x10fd   : > { %p2886_p7 = pnand %p2885_p4, %p3120_p5 }
0x10fe   : > { %p2891_p11 = por %p2890_p10, %p2889_p9 }
0x10ff   : > { %p2887_p8 = pneg %p2886_p7 }
0x1100   : > { %p2893_p13 = por %p2892_p12, %p2891_p11 }
0x1102   : > { %p2894_p0 = pnand %p2893_p13, %p2887_p8 }
0x1104   : > { %2897 = shalt.err (!%p2894_p0)
}
0x1105   : > { %2758 = dma.vmem_to_hbm [thread:$0]  (%p3120_p5), %s3475_s9, 128, %s3473_s11, %s2346_s28  }
0x1106 PF: > { %p2764_p1 = scmp.ge.s32.totalorder %s2932_s30, 2  ;;  %s2378_s7 = sand.u32 1, %s2920_s29  }
0x1107   : > { %s2379_s1 = scalar_lea.sflag [#allocation3], %s2378_s7 }
0x1108   : > { %p2761_p2 = pnand %p2764_p1, %p3124_p6 }
0x110a   : > { %2915 = dma.done.wait (!%p2761_p2), %s2379_s1, 128  }
0x110b   : > { %2917 = vsyncadd (!%p2761_p2), %s2379_s1, 4294967168  ;;  %s3609_s30 = sld [smem:[#allocation6_spill]]  ;;  %s3610_s27 = sld [smem:[#allocation5_spill]] }
0x110c   : > { %s3611_s6 = sld [smem:[#allocation7_spill]]  ;;  %s3612_s29 = smov %s2924_s2 }
0x1111   : > { %p36_p3 = scmp.ge.s32.totalorder %s3609_s30, 4   ;;  %s3613_s2 = smov %s3610_s27 }
0x1113   :  { %38 = sbr.rel (!%p36_p3) target bundleno = 16 (0x10), region = 172 }
0x111a   :  { %2391 = vsyncpa [#allocation3], 1 }
0x111b   :  { %2393 = vsyncpa [#allocation3 + $0x1], 1 }

</bundles_post_ra>
